<compile_context>
chip_gen: v7x
topology: tpu7x:2x2x1
jax: 0.10.0
libtpu: 0.0.40
codegen_flags: <defaults>
</compile_context>

<pallas_src>
import functools

import jax
import jax.numpy as jnp
from jax.experimental import pallas as pl
from jax.experimental.pallas import tpu as pltpu


def _pad3d_kernel(x_ref, o_ref, *, pad, value):
    """Pads one batch tile.

    x_ref: (B_TILE, D, H, W)          input tile
    o_ref: (B_TILE, D_out, H_out, W_out) output tile
    """
    p = pad
    D = x_ref.shape[1]
    H = x_ref.shape[2]
    W = x_ref.shape[3]

    # Fill the whole output tile with the constant padding value, then
    # overwrite the interior window with the input.
    o_ref[...] = jnp.full(o_ref.shape, value, dtype=o_ref.dtype)
    o_ref[:, p:p + D, p:p + H, p:p + W] = x_ref[...]


def pad3d(x, padding, pad_type="constant", value=0.0):
    """Equivalent of F.pad(x, (padding,)*6, pad_type, value) for 5-D NCDHW x."""
    if pad_type != "constant":
        # TODO(synk): 'reflect'/'replicate' pad types not implemented in the kernel.
        raise NotImplementedError("Only constant padding is implemented.")

    N, C, D, H, W = x.shape
    p = int(padding)
    if p == 0:
        return x

    D_out, H_out, W_out = D + 2 * p, H + 2 * p, W + 2 * p
    NC = N * C
    xr = x.reshape(NC, D, H, W)

    itemsize = jnp.dtype(x.dtype).itemsize
    in_block_bytes = D * H * W * itemsize
    out_block_bytes = D_out * H_out * W_out * itemsize

    # Double-buffered in+out blocks must fit a conservative VMEM budget
    # (~16 MiB keeps headroom under v7x's 32 MiB default scoped limit).
    vmem_budget = 16 * 1024 * 1024
    per_batch_elem = 2 * (in_block_bytes + out_block_bytes)
    max_tile = max(1, vmem_budget // per_batch_elem)

    # Largest divisor of NC that fits the budget.
    b_tile = 1
    for t in range(1, NC + 1):
        if NC % t == 0 and t <= max_tile:
            b_tile = t

    kernel = functools.partial(_pad3d_kernel, pad=p, value=float(value))

    total_bytes = (xr.size + NC * D_out * H_out * W_out) * itemsize

    out = pl.pallas_call(
        kernel,
        out_shape=jax.ShapeDtypeStruct((NC, D_out, H_out, W_out), x.dtype),
        grid=(NC // b_tile,),
        in_specs=[
            pl.BlockSpec((b_tile, D, H, W), lambda b: (b, 0, 0, 0)),
        ],
        out_specs=pl.BlockSpec(
            (b_tile, D_out, H_out, W_out), lambda b: (b, 0, 0, 0)
        ),
        compiler_params=pltpu.CompilerParams(
            dimension_semantics=("parallel",),
        ),
        cost_estimate=pl.CostEstimate(
            flops=0, transcendentals=0, bytes_accessed=total_bytes
        ),
    )(xr)

    return out.reshape(N, C, D_out, H_out, W_out)


if __name__ == "__main__":
    key = jax.random.PRNGKey(0)
    # Small 5-D input consistent with a volumetric (3-D conv) feature map.
    N, C, D, H, W = 2, 4, 8, 16, 16
    padding = 2
    pad_value = 0.0

    x = jax.random.normal(key, (N, C, D, H, W), dtype=jnp.float32)

    y = pad3d(x, padding, "constant", pad_value)
    y = jax.block_until_ready(y)

    # Reference: plain-JAX constant pad of the last three dims.
    ref = jnp.pad(
        x,
        ((0, 0), (0, 0), (padding, padding), (padding, padding), (padding, padding)),
        mode="constant",
        constant_values=pad_value,
    )

    assert y.shape == (N, C, D + 2 * padding, H + 2 * padding, W + 2 * padding)
    assert y.dtype == x.dtype
    assert jnp.array_equal(y, ref), "Pallas Pad3d output mismatch vs. reference"

    print("KERNEL_OK")
</pallas_src>

<mosaic_0001>
module attributes {stable_mosaic.version = 11 : i64} {
  func.func @_pad3d_kernel(%arg0: i32, %arg1: memref<8x8x16x16xf32, #tpu.memory_space<vmem>>, %arg2: memref<8x12x20x20xf32, #tpu.memory_space<vmem>>) attributes {dimension_semantics = [#tpu.dimension_semantics<parallel>], iteration_bounds = array<i64: 1>, scalar_prefetch = 0 : i64, scratch_operands = 0 : i64, tpu.core_type = #tpu.core_type<tc>, window_params = [{transform_indices = @transform_0, window_bounds = array<i64: 8, 8, 16, 16>}, {transform_indices = @transform_1, window_bounds = array<i64: 8, 12, 20, 20>}]} {
    %cst = arith.constant 0.000000e+00 : f32
    %0 = vector.broadcast %cst : f32 to vector<8x12x20x20xf32>
    %c0 = arith.constant 0 : index
    %c0_0 = arith.constant 0 : index
    %c0_1 = arith.constant 0 : index
    %c0_2 = arith.constant 0 : index
    %1 = vector.load %arg2[%c0, %c0_0, %c0_1, %c0_2] : memref<8x12x20x20xf32, #tpu.memory_space<vmem>>, vector<8x12x20x20xf32>
    tpu.vector_store %arg2[%c0, %c0_0, %c0_1, %c0_2], %0 {strides = array<i32>} : memref<8x12x20x20xf32, #tpu.memory_space<vmem>>, vector<8x12x20x20xf32>,
    %c0_3 = arith.constant 0 : index
    %c0_4 = arith.constant 0 : index
    %c0_5 = arith.constant 0 : index
    %c0_6 = arith.constant 0 : index
    %2 = vector.load %arg1[%c0_3, %c0_4, %c0_5, %c0_6] : memref<8x8x16x16xf32, #tpu.memory_space<vmem>>, vector<8x8x16x16xf32>
    %c0_7 = arith.constant 0 : index
    %c2 = arith.constant 2 : index
    %c2_8 = arith.constant 2 : index
    %c2_9 = arith.constant 2 : index
    %3 = vector.load %arg2[%c0_7, %c2, %c2_8, %c2_9] : memref<8x12x20x20xf32, #tpu.memory_space<vmem>>, vector<8x8x16x16xf32>
    tpu.vector_store %arg2[%c0_7, %c2, %c2_8, %c2_9], %2 {strides = array<i32>} : memref<8x12x20x20xf32, #tpu.memory_space<vmem>>, vector<8x8x16x16xf32>,
    return
  }
  func.func @transform_0(%arg0: i32) -> (i32, i32, i32, i32) {
    %c0_i32 = arith.constant 0 : i32
    %c0_i32_0 = arith.constant 0 : i32
    %c0_i32_1 = arith.constant 0 : i32
    %c0_i32_2 = arith.constant 0 : i32
    return %arg0, %c0_i32, %c0_i32_0, %c0_i32_1 : i32, i32, i32, i32
  }
  func.func @transform_1(%arg0: i32) -> (i32, i32, i32, i32) {
    %c0_i32 = arith.constant 0 : i32
    %c0_i32_0 = arith.constant 0 : i32
    %c0_i32_1 = arith.constant 0 : i32
    %c0_i32_2 = arith.constant 0 : i32
    return %arg0, %c0_i32, %c0_i32_0, %c0_i32_1 : i32, i32, i32, i32
  }
}

</mosaic_0001>

<bundles_post_ra>
// kernel: tpu_custom_call.1
= control target key start
LH: loop header
LB: loop body
LE: loop exit
PB: predicated region body
PF: predicated region fallthrough
CT: control target
= control target key end

     0   :  { %6 = vsyncpa [#allocation3], 0  ;;  %s1244_s6 = smov [#allocation2]   ;;  %s3351_s0 = inlined_call_operand.hbm [shape: f32[8,8,16,16], index: 0, kind: input, shape index: {}]   ;;  %s3352_s1 = inlined_call_operand.vmem [shape: f32[8,12,20,20], index: 1, kind: output, shape index: {}]  }
   0x1   :  { %s12_s7 = sshll.u32 %s1244_s6, 4  ;;  %s1220_s10 = scalar_lea.hbm %s3351_s0, 16384  ;;  %s13_s7 = int_to_ptr.vmem [resolvable:$true] %s12_s7 }
   0x2   :  { %p1221_p0 = scmp.ne.s32.totalorder %s3351_s0, %s1220_s10  ;;  %p1224_p1 = scmp.lt.u32.totalorder %s1220_s10, %s3351_s0 }
   0x4   :  { %p1226_p2 = pnand %p1224_p1, %p1221_p0 }
   0x6   :  { %1229 = shalt.err (!%p1226_p2)
}
   0x7   :  { %s1230_s15 = scalar_lea.vmem %s13_s7, 16384  ;;  %p1235_p4 = scmp.lt.s32.totalorder %s13_s7, %s13_s7 }
   0x8   :  { %p1231_p3 = scmp.ne.s32.totalorder %s13_s7, %s1230_s15  ;;  %p1236_p5 = scmp.lt.s32.totalorder %s1230_s15, %s1230_s15 }
   0xa   :  { %p1237_p6 = por %p1236_p5, %p1235_p4 }
   0xc   :  { %p1238_p7 = pnand %p1237_p6, %p1231_p3 }
   0xe   :  { %1241 = shalt.err (!%p1238_p7)
}
   0xf   :  { %s1245_s16 = smov 128   ;;  %s1246_s17 = smov 8  }
  0x10   :  { %18 = dma.hbm_to_vmem [thread:$0]  %s3351_s0, 16384, %s13_s7, [#allocation3], %s1245_s16, %s1245_s16, %s1246_s17  }
  0x11   :  { %1242 = dma.done.wait [#allocation3], 16384  }
  0x12   :  { %1243 = vsyncadd [#allocation3], 4294950912  ;;  %vm22_vm0 = vcmask 162816   ;;  %vm25_vm1 = vcmask 158720   ;;  %v1247_v0 = vmov 0.0   ;;  %v314_v1 = vld [vmem:[#allocation2 + $0x10] sm:$0xff] }
  0x13   :  { %23 = vst.msk [vmem:[%s3352_s1] sm:$0xff] %vm22_vm0, %v1247_v0  ;;  %24 = vst.msk [vmem:[%s3352_s1 + $0x8] sm:$0xff] %vm22_vm0, %v1247_v0  ;;  %v312_v2 = vld [vmem:[#allocation2] sm:$0xff]  ;;  %s1248_s25 = smov 2   ;;  %v315_v3 = vld [vmem:[#allocation2 + $0x18] sm:$0xff]  ;;  %vm953_vm2 = vcmask 146448  }
  0x14   :  { %26 = vst.msk [vmem:[%s3352_s1 + $0x10] sm:$0xf] %vm25_vm1, %v1247_v0  ;;  %29 = vst.msk [vmem:[%s3352_s1 + $0x28] sm:$0xf] %vm25_vm1, %v1247_v0  ;;  %572 = vrot.lane.b32.xlu1 %v314_v1, %s1248_s25  ;;  %568 = vrot.lane.b32.xlu0 %v312_v2, %s1248_s25  ;;  %v313_v4 = vld [vmem:[#allocation2 + $0x8] sm:$0xff]  ;;  %v316_v6 = vld [vmem:[#allocation2 + $0x20] sm:$0xff] }
  0x15   :  { %27 = vst.msk [vmem:[%s3352_s1 + $0x18] sm:$0xff] %vm22_vm0, %v1247_v0  ;;  %28 = vst.msk [vmem:[%s3352_s1 + $0x20] sm:$0xff] %vm22_vm0, %v1247_v0  ;;  %v317_v5 = vld [vmem:[#allocation2 + $0x28] sm:$0xff]  ;;  %v319_v7 = vld [vmem:[#allocation2 + $0x38] sm:$0xff] }
  0x16   :  { %54 = vst.msk [vmem:[%s3352_s1 + $0xf0] sm:$0xff] %vm22_vm0, %v1247_v0  ;;  %55 = vst.msk [vmem:[%s3352_s1 + $0xf8] sm:$0xff] %vm22_vm0, %v1247_v0  ;;  %v318_v8 = vld [vmem:[#allocation2 + $0x30] sm:$0xff]  ;;  %v321_v9 = vld [vmem:[#allocation2 + $0x48] sm:$0xff] }
  0x17   :  { %56 = vst.msk [vmem:[%s3352_s1 + $0x100] sm:$0xf] %vm25_vm1, %v1247_v0  ;;  %59 = vst.msk [vmem:[%s3352_s1 + $0x118] sm:$0xf] %vm25_vm1, %v1247_v0  ;;  %v320_v10 = vld [vmem:[#allocation2 + $0x40] sm:$0xff]  ;;  %v323_v11 = vld [vmem:[#allocation2 + $0x58] sm:$0xff] }
  0x18   :  { %57 = vst.msk [vmem:[%s3352_s1 + $0x108] sm:$0xff] %vm22_vm0, %v1247_v0  ;;  %58 = vst.msk [vmem:[%s3352_s1 + $0x110] sm:$0xff] %vm22_vm0, %v1247_v0  ;;  %574 = vrot.lane.b32.xlu1 %v315_v3, %s1248_s25  ;;  %570 = vrot.lane.b32.xlu0 %v313_v4, %s1248_s25  ;;  %v322_v12 = vld [vmem:[#allocation2 + $0x50] sm:$0xff]  ;;  %v325_v13 = vld [vmem:[#allocation2 + $0x68] sm:$0xff] }
  0x19   :  { %60 = vst.msk [vmem:[%s3352_s1 + $0x120] sm:$0xff] %vm22_vm0, %v1247_v0  ;;  %61 = vst.msk [vmem:[%s3352_s1 + $0x128] sm:$0xff] %vm22_vm0, %v1247_v0  ;;  %v324_v14 = vld [vmem:[#allocation2 + $0x60] sm:$0xff]  ;;  %v327_v15 = vld [vmem:[#allocation2 + $0x78] sm:$0xff] }
  0x1a   :  { %62 = vst.msk [vmem:[%s3352_s1 + $0x130] sm:$0xf] %vm25_vm1, %v1247_v0  ;;  %65 = vst.msk [vmem:[%s3352_s1 + $0x148] sm:$0xf] %vm25_vm1, %v1247_v0  ;;  %v326_v16 = vld [vmem:[#allocation2 + $0x70] sm:$0xff]  ;;  %v329_v17 = vld [vmem:[#allocation2 + $0x88] sm:$0xff] }
  0x1b   :  { %63 = vst.msk [vmem:[%s3352_s1 + $0x138] sm:$0xff] %vm22_vm0, %v1247_v0  ;;  %64 = vst.msk [vmem:[%s3352_s1 + $0x140] sm:$0xff] %vm22_vm0, %v1247_v0  ;;  %v328_v18 = vld [vmem:[#allocation2 + $0x80] sm:$0xff]  ;;  %v331_v19 = vld [vmem:[#allocation2 + $0x98] sm:$0xff] }
  0x1c   :  { %90 = vst.msk [vmem:[%s3352_s1 + $0x210] sm:$0xff] %vm22_vm0, %v1247_v0  ;;  %91 = vst.msk [vmem:[%s3352_s1 + $0x218] sm:$0xff] %vm22_vm0, %v1247_v0  ;;  %578 = vrot.lane.b32.xlu1 %v317_v5, %s1248_s25  ;;  %576 = vrot.lane.b32.xlu0 %v316_v6, %s1248_s25  ;;  %v330_v20 = vld [vmem:[#allocation2 + $0x90] sm:$0xff]  ;;  %v333_v21 = vld [vmem:[#allocation2 + $0xa8] sm:$0xff] }
  0x1d   :  { %92 = vst.msk [vmem:[%s3352_s1 + $0x220] sm:$0xf] %vm25_vm1, %v1247_v0  ;;  %95 = vst.msk [vmem:[%s3352_s1 + $0x238] sm:$0xf] %vm25_vm1, %v1247_v0  ;;  %v332_v22 = vld [vmem:[#allocation2 + $0xa0] sm:$0xff]  ;;  %v335_v23 = vld [vmem:[#allocation2 + $0xb8] sm:$0xff] }
  0x1e   :  { %93 = vst.msk [vmem:[%s3352_s1 + $0x228] sm:$0xff] %vm22_vm0, %v1247_v0  ;;  %94 = vst.msk [vmem:[%s3352_s1 + $0x230] sm:$0xff] %vm22_vm0, %v1247_v0  ;;  %v334_v24 = vld [vmem:[#allocation2 + $0xb0] sm:$0xff]  ;;  %v337_v25 = vld [vmem:[#allocation2 + $0xc8] sm:$0xff] }
  0x1f   :  { %96 = vst.msk [vmem:[%s3352_s1 + $0x240] sm:$0xff] %vm22_vm0, %v1247_v0  ;;  %97 = vst.msk [vmem:[%s3352_s1 + $0x248] sm:$0xff] %vm22_vm0, %v1247_v0  ;;  %v336_v26 = vld [vmem:[#allocation2 + $0xc0] sm:$0xff]  ;;  %v339_v27 = vld [vmem:[#allocation2 + $0xd8] sm:$0xff] }
  0x20   :  { %98 = vst.msk [vmem:[%s3352_s1 + $0x250] sm:$0xf] %vm25_vm1, %v1247_v0  ;;  %101 = vst.msk [vmem:[%s3352_s1 + $0x268] sm:$0xf] %vm25_vm1, %v1247_v0  ;;  %582 = vrot.lane.b32.xlu1 %v319_v7, %s1248_s25  ;;  %580 = vrot.lane.b32.xlu0 %v318_v8, %s1248_s25  ;;  %v338_v28 = vld [vmem:[#allocation2 + $0xd0] sm:$0xff]  ;;  %v341_v29 = vld [vmem:[#allocation2 + $0xe8] sm:$0xff] }
  0x21   :  { %99 = vst.msk [vmem:[%s3352_s1 + $0x258] sm:$0xff] %vm22_vm0, %v1247_v0  ;;  %100 = vst.msk [vmem:[%s3352_s1 + $0x260] sm:$0xff] %vm22_vm0, %v1247_v0  ;;  %v340_v30 = vld [vmem:[#allocation2 + $0xe0] sm:$0xff]  ;;  %v343_v31 = vld [vmem:[#allocation2 + $0xf8] sm:$0xff] }
  0x22   :  { %126 = vst.msk [vmem:[%s3352_s1 + $0x330] sm:$0xff] %vm22_vm0, %v1247_v0  ;;  %127 = vst.msk [vmem:[%s3352_s1 + $0x338] sm:$0xff] %vm22_vm0, %v1247_v0  ;;  %v342_v32 = vld [vmem:[#allocation2 + $0xf0] sm:$0xff]  ;;  %v345_v33 = vld [vmem:[#allocation2 + $0x108] sm:$0xff] }
  0x23   :  { %128 = vst.msk [vmem:[%s3352_s1 + $0x340] sm:$0xf] %vm25_vm1, %v1247_v0  ;;  %131 = vst.msk [vmem:[%s3352_s1 + $0x358] sm:$0xf] %vm25_vm1, %v1247_v0  ;;  %v344_v34 = vld [vmem:[#allocation2 + $0x100] sm:$0xff]  ;;  %v347_v35 = vld [vmem:[#allocation2 + $0x118] sm:$0xff] }
  0x24   :  { %129 = vst.msk [vmem:[%s3352_s1 + $0x348] sm:$0xff] %vm22_vm0, %v1247_v0  ;;  %130 = vst.msk [vmem:[%s3352_s1 + $0x350] sm:$0xff] %vm22_vm0, %v1247_v0  ;;  %586 = vrot.lane.b32.xlu1 %v321_v9, %s1248_s25  ;;  %584 = vrot.lane.b32.xlu0 %v320_v10, %s1248_s25  ;;  %v346_v36 = vld [vmem:[#allocation2 + $0x110] sm:$0xff]  ;;  %v349_v37 = vld [vmem:[#allocation2 + $0x128] sm:$0xff] }
  0x25   :  { %132 = vst.msk [vmem:[%s3352_s1 + $0x360] sm:$0xff] %vm22_vm0, %v1247_v0  ;;  %133 = vst.msk [vmem:[%s3352_s1 + $0x368] sm:$0xff] %vm22_vm0, %v1247_v0  ;;  %v348_v38 = vld [vmem:[#allocation2 + $0x120] sm:$0xff]  ;;  %v351_v39 = vld [vmem:[#allocation2 + $0x138] sm:$0xff] }
  0x26   :  { %134 = vst.msk [vmem:[%s3352_s1 + $0x370] sm:$0xf] %vm25_vm1, %v1247_v0  ;;  %137 = vst.msk [vmem:[%s3352_s1 + $0x388] sm:$0xf] %vm25_vm1, %v1247_v0  ;;  %v350_v40 = vld [vmem:[#allocation2 + $0x130] sm:$0xff]  ;;  %v353_v41 = vld [vmem:[#allocation2 + $0x148] sm:$0xff] }
  0x27   :  { %135 = vst.msk [vmem:[%s3352_s1 + $0x378] sm:$0xff] %vm22_vm0, %v1247_v0  ;;  %136 = vst.msk [vmem:[%s3352_s1 + $0x380] sm:$0xff] %vm22_vm0, %v1247_v0  ;;  %v352_v42 = vld [vmem:[#allocation2 + $0x140] sm:$0xff]  ;;  %v355_v43 = vld [vmem:[#allocation2 + $0x158] sm:$0xff] }
  0x28   :  { %162 = vst.msk [vmem:[%s3352_s1 + $0x450] sm:$0xff] %vm22_vm0, %v1247_v0  ;;  %163 = vst.msk [vmem:[%s3352_s1 + $0x458] sm:$0xff] %vm22_vm0, %v1247_v0  ;;  %590 = vrot.lane.b32.xlu1 %v323_v11, %s1248_s25  ;;  %588 = vrot.lane.b32.xlu0 %v322_v12, %s1248_s25  ;;  %v354_v44 = vld [vmem:[#allocation2 + $0x150] sm:$0xff]  ;;  %v357_v45 = vld [vmem:[#allocation2 + $0x168] sm:$0xff] }
  0x29   :  { %164 = vst.msk [vmem:[%s3352_s1 + $0x460] sm:$0xf] %vm25_vm1, %v1247_v0  ;;  %167 = vst.msk [vmem:[%s3352_s1 + $0x478] sm:$0xf] %vm25_vm1, %v1247_v0  ;;  %v356_v46 = vld [vmem:[#allocation2 + $0x160] sm:$0xff]  ;;  %v359_v47 = vld [vmem:[#allocation2 + $0x178] sm:$0xff] }
  0x2a   :  { %165 = vst.msk [vmem:[%s3352_s1 + $0x468] sm:$0xff] %vm22_vm0, %v1247_v0  ;;  %166 = vst.msk [vmem:[%s3352_s1 + $0x470] sm:$0xff] %vm22_vm0, %v1247_v0  ;;  %v358_v48 = vld [vmem:[#allocation2 + $0x170] sm:$0xff]  ;;  %v361_v49 = vld [vmem:[#allocation2 + $0x188] sm:$0xff] }
  0x2b   :  { %168 = vst.msk [vmem:[%s3352_s1 + $0x480] sm:$0xff] %vm22_vm0, %v1247_v0  ;;  %169 = vst.msk [vmem:[%s3352_s1 + $0x488] sm:$0xff] %vm22_vm0, %v1247_v0  ;;  %v360_v50 = vld [vmem:[#allocation2 + $0x180] sm:$0xff]  ;;  %v363_v51 = vld [vmem:[#allocation2 + $0x198] sm:$0xff] }
  0x2c   :  { %170 = vst.msk [vmem:[%s3352_s1 + $0x490] sm:$0xf] %vm25_vm1, %v1247_v0  ;;  %173 = vst.msk [vmem:[%s3352_s1 + $0x4a8] sm:$0xf] %vm25_vm1, %v1247_v0  ;;  %594 = vrot.lane.b32.xlu1 %v325_v13, %s1248_s25  ;;  %592 = vrot.lane.b32.xlu0 %v324_v14, %s1248_s25  ;;  %v362_v52 = vld [vmem:[#allocation2 + $0x190] sm:$0xff]  ;;  %v365_v53 = vld [vmem:[#allocation2 + $0x1a8] sm:$0xff] }
  0x2d   :  { %171 = vst.msk [vmem:[%s3352_s1 + $0x498] sm:$0xff] %vm22_vm0, %v1247_v0  ;;  %172 = vst.msk [vmem:[%s3352_s1 + $0x4a0] sm:$0xff] %vm22_vm0, %v1247_v0  ;;  %v364_v54 = vld [vmem:[#allocation2 + $0x1a0] sm:$0xff]  ;;  %v367_v55 = vld [vmem:[#allocation2 + $0x1b8] sm:$0xff] }
  0x2e   :  { %198 = vst.msk [vmem:[%s3352_s1 + $0x570] sm:$0xff] %vm22_vm0, %v1247_v0  ;;  %199 = vst.msk [vmem:[%s3352_s1 + $0x578] sm:$0xff] %vm22_vm0, %v1247_v0  ;;  %v366_v56 = vld [vmem:[#allocation2 + $0x1b0] sm:$0xff]  ;;  %v369_v57 = vld [vmem:[#allocation2 + $0x1c8] sm:$0xff] }
  0x2f   :  { %200 = vst.msk [vmem:[%s3352_s1 + $0x580] sm:$0xf] %vm25_vm1, %v1247_v0  ;;  %203 = vst.msk [vmem:[%s3352_s1 + $0x598] sm:$0xf] %vm25_vm1, %v1247_v0  ;;  %v368_v58 = vld [vmem:[#allocation2 + $0x1c0] sm:$0xff]  ;;  %v371_v59 = vld [vmem:[#allocation2 + $0x1d8] sm:$0xff] }
  0x30   :  { %201 = vst.msk [vmem:[%s3352_s1 + $0x588] sm:$0xff] %vm22_vm0, %v1247_v0  ;;  %202 = vst.msk [vmem:[%s3352_s1 + $0x590] sm:$0xff] %vm22_vm0, %v1247_v0  ;;  %598 = vrot.lane.b32.xlu1 %v327_v15, %s1248_s25  ;;  %596 = vrot.lane.b32.xlu0 %v326_v16, %s1248_s25  ;;  %v370_v60 = vld [vmem:[#allocation2 + $0x1d0] sm:$0xff]  ;;  %v373_v63 = vld [vmem:[#allocation2 + $0x1e8] sm:$0xff] }
  0x31   :  { %204 = vst.msk [vmem:[%s3352_s1 + $0x5a0] sm:$0xff] %vm22_vm0, %v1247_v0  ;;  %205 = vst.msk [vmem:[%s3352_s1 + $0x5a8] sm:$0xff] %vm22_vm0, %v1247_v0  ;;  %v375_v3 = vld [vmem:[#allocation2 + $0x1f8] sm:$0xff]  ;;  %v374_v4 = vld [vmem:[#allocation2 + $0x1f0] sm:$0xff] }
  0x32   :  { %206 = vst.msk [vmem:[%s3352_s1 + $0x5b0] sm:$0xf] %vm25_vm1, %v1247_v0  ;;  %209 = vst.msk [vmem:[%s3352_s1 + $0x5c8] sm:$0xf] %vm25_vm1, %v1247_v0  ;;  %v377_v7 = vld [vmem:[#allocation2 + $0x208] sm:$0xff]  ;;  %v376_v8 = vld [vmem:[#allocation2 + $0x200] sm:$0xff] }
  0x33   :  { %207 = vst.msk [vmem:[%s3352_s1 + $0x5b8] sm:$0xff] %vm22_vm0, %v1247_v0  ;;  %208 = vst.msk [vmem:[%s3352_s1 + $0x5c0] sm:$0xff] %vm22_vm0, %v1247_v0  ;;  %v379_v11 = vld [vmem:[#allocation2 + $0x218] sm:$0xff]  ;;  %v378_v12 = vld [vmem:[#allocation2 + $0x210] sm:$0xff] }
  0x34   :  { %234 = vst.msk [vmem:[%s3352_s1 + $0x690] sm:$0xff] %vm22_vm0, %v1247_v0  ;;  %235 = vst.msk [vmem:[%s3352_s1 + $0x698] sm:$0xff] %vm22_vm0, %v1247_v0  ;;  %602 = vrot.lane.b32.xlu1 %v329_v17, %s1248_s25  ;;  %600 = vrot.lane.b32.xlu0 %v328_v18, %s1248_s25  ;;  %v381_v15 = vld [vmem:[#allocation2 + $0x228] sm:$0xff]  ;;  %v380_v16 = vld [vmem:[#allocation2 + $0x220] sm:$0xff] }
  0x35   :  { %236 = vst.msk [vmem:[%s3352_s1 + $0x6a0] sm:$0xf] %vm25_vm1, %v1247_v0  ;;  %239 = vst.msk [vmem:[%s3352_s1 + $0x6b8] sm:$0xf] %vm25_vm1, %v1247_v0 }
  0x36   :  { %237 = vst.msk [vmem:[%s3352_s1 + $0x6a8] sm:$0xff] %vm22_vm0, %v1247_v0  ;;  %238 = vst.msk [vmem:[%s3352_s1 + $0x6b0] sm:$0xff] %vm22_vm0, %v1247_v0 }
  0x37   :  { %240 = vst.msk [vmem:[%s3352_s1 + $0x6c0] sm:$0xff] %vm22_vm0, %v1247_v0  ;;  %241 = vst.msk [vmem:[%s3352_s1 + $0x6c8] sm:$0xff] %vm22_vm0, %v1247_v0 }
  0x38   :  { %242 = vst.msk [vmem:[%s3352_s1 + $0x6d0] sm:$0xf] %vm25_vm1, %v1247_v0  ;;  %245 = vst.msk [vmem:[%s3352_s1 + $0x6e8] sm:$0xf] %vm25_vm1, %v1247_v0  ;;  %606 = vrot.lane.b32.xlu1 %v331_v19, %s1248_s25  ;;  %604 = vrot.lane.b32.xlu0 %v330_v20, %s1248_s25  ;;  %v383_v19 = vld [vmem:[#allocation2 + $0x238] sm:$0xff]  ;;  %v382_v20 = vld [vmem:[#allocation2 + $0x230] sm:$0xff] }
  0x39   :  { %243 = vst.msk [vmem:[%s3352_s1 + $0x6d8] sm:$0xff] %vm22_vm0, %v1247_v0  ;;  %244 = vst.msk [vmem:[%s3352_s1 + $0x6e0] sm:$0xff] %vm22_vm0, %v1247_v0 }
  0x3a   :  { %270 = vst.msk [vmem:[%s3352_s1 + $0x7b0] sm:$0xff] %vm22_vm0, %v1247_v0  ;;  %271 = vst.msk [vmem:[%s3352_s1 + $0x7b8] sm:$0xff] %vm22_vm0, %v1247_v0 }
  0x3b   :  { %272 = vst.msk [vmem:[%s3352_s1 + $0x7c0] sm:$0xf] %vm25_vm1, %v1247_v0  ;;  %275 = vst.msk [vmem:[%s3352_s1 + $0x7d8] sm:$0xf] %vm25_vm1, %v1247_v0 }
  0x3c   :  { %273 = vst.msk [vmem:[%s3352_s1 + $0x7c8] sm:$0xff] %vm22_vm0, %v1247_v0  ;;  %274 = vst.msk [vmem:[%s3352_s1 + $0x7d0] sm:$0xff] %vm22_vm0, %v1247_v0  ;;  %610 = vrot.lane.b32.xlu1 %v333_v21, %s1248_s25  ;;  %608 = vrot.lane.b32.xlu0 %v332_v22, %s1248_s25 }
  0x3d   :  { %276 = vst.msk [vmem:[%s3352_s1 + $0x7e0] sm:$0xff] %vm22_vm0, %v1247_v0  ;;  %277 = vst.msk [vmem:[%s3352_s1 + $0x7e8] sm:$0xff] %vm22_vm0, %v1247_v0 }
  0x3e   :  { %278 = vst.msk [vmem:[%s3352_s1 + $0x7f0] sm:$0xf] %vm25_vm1, %v1247_v0  ;;  %281 = vst.msk [vmem:[%s3352_s1 + $0x808] sm:$0xf] %vm25_vm1, %v1247_v0 }
  0x3f   :  { %279 = vst.msk [vmem:[%s3352_s1 + $0x7f8] sm:$0xff] %vm22_vm0, %v1247_v0  ;;  %280 = vst.msk [vmem:[%s3352_s1 + $0x800] sm:$0xff] %vm22_vm0, %v1247_v0 }
  0x40   :  { %306 = vst.msk [vmem:[%s3352_s1 + $0x8d0] sm:$0xff] %vm22_vm0, %v1247_v0  ;;  %307 = vst.msk [vmem:[%s3352_s1 + $0x8d8] sm:$0xff] %vm22_vm0, %v1247_v0  ;;  %614 = vrot.lane.b32.xlu1 %v335_v23, %s1248_s25  ;;  %612 = vrot.lane.b32.xlu0 %v334_v24, %s1248_s25  ;;  %v385_v23 = vld [vmem:[#allocation2 + $0x248] sm:$0xff]  ;;  %v384_v24 = vld [vmem:[#allocation2 + $0x240] sm:$0xff] }
  0x41   :  { %308 = vst.msk [vmem:[%s3352_s1 + $0x8e0] sm:$0xf] %vm25_vm1, %v1247_v0  ;;  %311 = vst.msk [vmem:[%s3352_s1 + $0x8f8] sm:$0xf] %vm25_vm1, %v1247_v0 }
  0x42   :  { %309 = vst.msk [vmem:[%s3352_s1 + $0x8e8] sm:$0xff] %vm22_vm0, %v1247_v0  ;;  %310 = vst.msk [vmem:[%s3352_s1 + $0x8f0] sm:$0xff] %vm22_vm0, %v1247_v0 }
  0x43   :  { %30 = vst.msk [vmem:[%s3352_s1 + $0x30] sm:$0xff] %vm22_vm0, %v1247_v0  ;;  %31 = vst.msk [vmem:[%s3352_s1 + $0x38] sm:$0xff] %vm22_vm0, %v1247_v0 }
  0x44   :  { %32 = vst.msk [vmem:[%s3352_s1 + $0x40] sm:$0xf] %vm25_vm1, %v1247_v0  ;;  %35 = vst.msk [vmem:[%s3352_s1 + $0x58] sm:$0xf] %vm25_vm1, %v1247_v0  ;;  %618 = vrot.lane.b32.xlu1 %v337_v25, %s1248_s25  ;;  %616 = vrot.lane.b32.xlu0 %v336_v26, %s1248_s25 }
  0x45   :  { %33 = vst.msk [vmem:[%s3352_s1 + $0x48] sm:$0xff] %vm22_vm0, %v1247_v0  ;;  %34 = vst.msk [vmem:[%s3352_s1 + $0x50] sm:$0xff] %vm22_vm0, %v1247_v0 }
  0x46   :  { %36 = vst.msk [vmem:[%s3352_s1 + $0x60] sm:$0xff] %vm22_vm0, %v1247_v0  ;;  %37 = vst.msk [vmem:[%s3352_s1 + $0x68] sm:$0xff] %vm22_vm0, %v1247_v0 }
  0x47   :  { %38 = vst.msk [vmem:[%s3352_s1 + $0x70] sm:$0xf] %vm25_vm1, %v1247_v0  ;;  %41 = vst.msk [vmem:[%s3352_s1 + $0x88] sm:$0xf] %vm25_vm1, %v1247_v0 }
  0x48   :  { %39 = vst.msk [vmem:[%s3352_s1 + $0x78] sm:$0xff] %vm22_vm0, %v1247_v0  ;;  %40 = vst.msk [vmem:[%s3352_s1 + $0x80] sm:$0xff] %vm22_vm0, %v1247_v0  ;;  %622 = vrot.lane.b32.xlu1 %v339_v27, %s1248_s25  ;;  %620 = vrot.lane.b32.xlu0 %v338_v28, %s1248_s25  ;;  %v387_v27 = vld [vmem:[#allocation2 + $0x258] sm:$0xff]  ;;  %v386_v28 = vld [vmem:[#allocation2 + $0x250] sm:$0xff] }
  0x49   :  { %42 = vst.msk [vmem:[%s3352_s1 + $0x90] sm:$0xff] %vm22_vm0, %v1247_v0  ;;  %43 = vst.msk [vmem:[%s3352_s1 + $0x98] sm:$0xff] %vm22_vm0, %v1247_v0 }
  0x4a   :  { %44 = vst.msk [vmem:[%s3352_s1 + $0xa0] sm:$0xf] %vm25_vm1, %v1247_v0  ;;  %47 = vst.msk [vmem:[%s3352_s1 + $0xb8] sm:$0xf] %vm25_vm1, %v1247_v0 }
  0x4b   :  { %45 = vst.msk [vmem:[%s3352_s1 + $0xa8] sm:$0xff] %vm22_vm0, %v1247_v0  ;;  %46 = vst.msk [vmem:[%s3352_s1 + $0xb0] sm:$0xff] %vm22_vm0, %v1247_v0 }
  0x4c   :  { %48 = vst.msk [vmem:[%s3352_s1 + $0xc0] sm:$0xff] %vm22_vm0, %v1247_v0  ;;  %49 = vst.msk [vmem:[%s3352_s1 + $0xc8] sm:$0xff] %vm22_vm0, %v1247_v0  ;;  %626 = vrot.lane.b32.xlu1 %v341_v29, %s1248_s25  ;;  %624 = vrot.lane.b32.xlu0 %v340_v30, %s1248_s25 }
  0x4d   :  { %50 = vst.msk [vmem:[%s3352_s1 + $0xd0] sm:$0xf] %vm25_vm1, %v1247_v0  ;;  %53 = vst.msk [vmem:[%s3352_s1 + $0xe8] sm:$0xf] %vm25_vm1, %v1247_v0 }
  0x4e   :  { %51 = vst.msk [vmem:[%s3352_s1 + $0xd8] sm:$0xff] %vm22_vm0, %v1247_v0  ;;  %52 = vst.msk [vmem:[%s3352_s1 + $0xe0] sm:$0xff] %vm22_vm0, %v1247_v0 }
  0x4f   :  { %66 = vst.msk [vmem:[%s3352_s1 + $0x150] sm:$0xff] %vm22_vm0, %v1247_v0  ;;  %67 = vst.msk [vmem:[%s3352_s1 + $0x158] sm:$0xff] %vm22_vm0, %v1247_v0 }
  0x50   :  { %68 = vst.msk [vmem:[%s3352_s1 + $0x160] sm:$0xf] %vm25_vm1, %v1247_v0  ;;  %71 = vst.msk [vmem:[%s3352_s1 + $0x178] sm:$0xf] %vm25_vm1, %v1247_v0  ;;  %630 = vrot.lane.b32.xlu1 %v343_v31, %s1248_s25  ;;  %628 = vrot.lane.b32.xlu0 %v342_v32, %s1248_s25  ;;  %v389_v31 = vld [vmem:[#allocation2 + $0x268] sm:$0xff]  ;;  %v388_v32 = vld [vmem:[#allocation2 + $0x260] sm:$0xff] }
  0x51   :  { %69 = vst.msk [vmem:[%s3352_s1 + $0x168] sm:$0xff] %vm22_vm0, %v1247_v0  ;;  %70 = vst.msk [vmem:[%s3352_s1 + $0x170] sm:$0xff] %vm22_vm0, %v1247_v0 }
  0x52   :  { %72 = vst.msk [vmem:[%s3352_s1 + $0x180] sm:$0xff] %vm22_vm0, %v1247_v0  ;;  %73 = vst.msk [vmem:[%s3352_s1 + $0x188] sm:$0xff] %vm22_vm0, %v1247_v0 }
  0x53   :  { %74 = vst.msk [vmem:[%s3352_s1 + $0x190] sm:$0xf] %vm25_vm1, %v1247_v0  ;;  %77 = vst.msk [vmem:[%s3352_s1 + $0x1a8] sm:$0xf] %vm25_vm1, %v1247_v0 }
  0x54   :  { %75 = vst.msk [vmem:[%s3352_s1 + $0x198] sm:$0xff] %vm22_vm0, %v1247_v0  ;;  %76 = vst.msk [vmem:[%s3352_s1 + $0x1a0] sm:$0xff] %vm22_vm0, %v1247_v0  ;;  %634 = vrot.lane.b32.xlu1 %v345_v33, %s1248_s25  ;;  %632 = vrot.lane.b32.xlu0 %v344_v34, %s1248_s25 }
  0x55   :  { %78 = vst.msk [vmem:[%s3352_s1 + $0x1b0] sm:$0xff] %vm22_vm0, %v1247_v0  ;;  %79 = vst.msk [vmem:[%s3352_s1 + $0x1b8] sm:$0xff] %vm22_vm0, %v1247_v0 }
  0x56   :  { %80 = vst.msk [vmem:[%s3352_s1 + $0x1c0] sm:$0xf] %vm25_vm1, %v1247_v0  ;;  %83 = vst.msk [vmem:[%s3352_s1 + $0x1d8] sm:$0xf] %vm25_vm1, %v1247_v0 }
  0x57   :  { %81 = vst.msk [vmem:[%s3352_s1 + $0x1c8] sm:$0xff] %vm22_vm0, %v1247_v0  ;;  %82 = vst.msk [vmem:[%s3352_s1 + $0x1d0] sm:$0xff] %vm22_vm0, %v1247_v0 }
  0x58   :  { %84 = vst.msk [vmem:[%s3352_s1 + $0x1e0] sm:$0xff] %vm22_vm0, %v1247_v0  ;;  %85 = vst.msk [vmem:[%s3352_s1 + $0x1e8] sm:$0xff] %vm22_vm0, %v1247_v0  ;;  %638 = vrot.lane.b32.xlu1 %v347_v35, %s1248_s25  ;;  %636 = vrot.lane.b32.xlu0 %v346_v36, %s1248_s25  ;;  %v391_v35 = vld [vmem:[#allocation2 + $0x278] sm:$0xff]  ;;  %v390_v36 = vld [vmem:[#allocation2 + $0x270] sm:$0xff] }
  0x59   :  { %86 = vst.msk [vmem:[%s3352_s1 + $0x1f0] sm:$0xf] %vm25_vm1, %v1247_v0  ;;  %89 = vst.msk [vmem:[%s3352_s1 + $0x208] sm:$0xf] %vm25_vm1, %v1247_v0 }
  0x5a   :  { %87 = vst.msk [vmem:[%s3352_s1 + $0x1f8] sm:$0xff] %vm22_vm0, %v1247_v0  ;;  %88 = vst.msk [vmem:[%s3352_s1 + $0x200] sm:$0xff] %vm22_vm0, %v1247_v0 }
  0x5b   :  { %102 = vst.msk [vmem:[%s3352_s1 + $0x270] sm:$0xff] %vm22_vm0, %v1247_v0  ;;  %103 = vst.msk [vmem:[%s3352_s1 + $0x278] sm:$0xff] %vm22_vm0, %v1247_v0 }
  0x5c   :  { %104 = vst.msk [vmem:[%s3352_s1 + $0x280] sm:$0xf] %vm25_vm1, %v1247_v0  ;;  %107 = vst.msk [vmem:[%s3352_s1 + $0x298] sm:$0xf] %vm25_vm1, %v1247_v0  ;;  %642 = vrot.lane.b32.xlu1 %v349_v37, %s1248_s25  ;;  %640 = vrot.lane.b32.xlu0 %v348_v38, %s1248_s25 }
  0x5d   :  { %105 = vst.msk [vmem:[%s3352_s1 + $0x288] sm:$0xff] %vm22_vm0, %v1247_v0  ;;  %106 = vst.msk [vmem:[%s3352_s1 + $0x290] sm:$0xff] %vm22_vm0, %v1247_v0 }
  0x5e   :  { %108 = vst.msk [vmem:[%s3352_s1 + $0x2a0] sm:$0xff] %vm22_vm0, %v1247_v0  ;;  %109 = vst.msk [vmem:[%s3352_s1 + $0x2a8] sm:$0xff] %vm22_vm0, %v1247_v0 }
  0x5f   :  { %110 = vst.msk [vmem:[%s3352_s1 + $0x2b0] sm:$0xf] %vm25_vm1, %v1247_v0  ;;  %113 = vst.msk [vmem:[%s3352_s1 + $0x2c8] sm:$0xf] %vm25_vm1, %v1247_v0 }
  0x60   :  { %111 = vst.msk [vmem:[%s3352_s1 + $0x2b8] sm:$0xff] %vm22_vm0, %v1247_v0  ;;  %112 = vst.msk [vmem:[%s3352_s1 + $0x2c0] sm:$0xff] %vm22_vm0, %v1247_v0  ;;  %646 = vrot.lane.b32.xlu1 %v351_v39, %s1248_s25  ;;  %644 = vrot.lane.b32.xlu0 %v350_v40, %s1248_s25  ;;  %v393_v39 = vld [vmem:[#allocation2 + $0x288] sm:$0xff]  ;;  %v392_v40 = vld [vmem:[#allocation2 + $0x280] sm:$0xff] }
  0x61   :  { %114 = vst.msk [vmem:[%s3352_s1 + $0x2d0] sm:$0xff] %vm22_vm0, %v1247_v0  ;;  %115 = vst.msk [vmem:[%s3352_s1 + $0x2d8] sm:$0xff] %vm22_vm0, %v1247_v0 }
  0x62   :  { %116 = vst.msk [vmem:[%s3352_s1 + $0x2e0] sm:$0xf] %vm25_vm1, %v1247_v0  ;;  %119 = vst.msk [vmem:[%s3352_s1 + $0x2f8] sm:$0xf] %vm25_vm1, %v1247_v0 }
  0x63   :  { %117 = vst.msk [vmem:[%s3352_s1 + $0x2e8] sm:$0xff] %vm22_vm0, %v1247_v0  ;;  %118 = vst.msk [vmem:[%s3352_s1 + $0x2f0] sm:$0xff] %vm22_vm0, %v1247_v0 }
  0x64   :  { %120 = vst.msk [vmem:[%s3352_s1 + $0x300] sm:$0xff] %vm22_vm0, %v1247_v0  ;;  %121 = vst.msk [vmem:[%s3352_s1 + $0x308] sm:$0xff] %vm22_vm0, %v1247_v0  ;;  %650 = vrot.lane.b32.xlu1 %v353_v41, %s1248_s25  ;;  %648 = vrot.lane.b32.xlu0 %v352_v42, %s1248_s25 }
  0x65   :  { %122 = vst.msk [vmem:[%s3352_s1 + $0x310] sm:$0xf] %vm25_vm1, %v1247_v0  ;;  %125 = vst.msk [vmem:[%s3352_s1 + $0x328] sm:$0xf] %vm25_vm1, %v1247_v0 }
  0x66   :  { %123 = vst.msk [vmem:[%s3352_s1 + $0x318] sm:$0xff] %vm22_vm0, %v1247_v0  ;;  %124 = vst.msk [vmem:[%s3352_s1 + $0x320] sm:$0xff] %vm22_vm0, %v1247_v0 }
  0x67   :  { %138 = vst.msk [vmem:[%s3352_s1 + $0x390] sm:$0xff] %vm22_vm0, %v1247_v0  ;;  %139 = vst.msk [vmem:[%s3352_s1 + $0x398] sm:$0xff] %vm22_vm0, %v1247_v0 }
  0x68   :  { %140 = vst.msk [vmem:[%s3352_s1 + $0x3a0] sm:$0xf] %vm25_vm1, %v1247_v0  ;;  %143 = vst.msk [vmem:[%s3352_s1 + $0x3b8] sm:$0xf] %vm25_vm1, %v1247_v0  ;;  %654 = vrot.lane.b32.xlu1 %v355_v43, %s1248_s25  ;;  %652 = vrot.lane.b32.xlu0 %v354_v44, %s1248_s25  ;;  %v395_v43 = vld [vmem:[#allocation2 + $0x298] sm:$0xff]  ;;  %v394_v44 = vld [vmem:[#allocation2 + $0x290] sm:$0xff] }
  0x69   :  { %141 = vst.msk [vmem:[%s3352_s1 + $0x3a8] sm:$0xff] %vm22_vm0, %v1247_v0  ;;  %142 = vst.msk [vmem:[%s3352_s1 + $0x3b0] sm:$0xff] %vm22_vm0, %v1247_v0 }
  0x6a   :  { %144 = vst.msk [vmem:[%s3352_s1 + $0x3c0] sm:$0xff] %vm22_vm0, %v1247_v0  ;;  %145 = vst.msk [vmem:[%s3352_s1 + $0x3c8] sm:$0xff] %vm22_vm0, %v1247_v0 }
  0x6b   :  { %146 = vst.msk [vmem:[%s3352_s1 + $0x3d0] sm:$0xf] %vm25_vm1, %v1247_v0  ;;  %149 = vst.msk [vmem:[%s3352_s1 + $0x3e8] sm:$0xf] %vm25_vm1, %v1247_v0 }
  0x6c   :  { %147 = vst.msk [vmem:[%s3352_s1 + $0x3d8] sm:$0xff] %vm22_vm0, %v1247_v0  ;;  %148 = vst.msk [vmem:[%s3352_s1 + $0x3e0] sm:$0xff] %vm22_vm0, %v1247_v0  ;;  %658 = vrot.lane.b32.xlu1 %v357_v45, %s1248_s25  ;;  %656 = vrot.lane.b32.xlu0 %v356_v46, %s1248_s25 }
  0x6d   :  { %150 = vst.msk [vmem:[%s3352_s1 + $0x3f0] sm:$0xff] %vm22_vm0, %v1247_v0  ;;  %151 = vst.msk [vmem:[%s3352_s1 + $0x3f8] sm:$0xff] %vm22_vm0, %v1247_v0 }
  0x6e   :  { %152 = vst.msk [vmem:[%s3352_s1 + $0x400] sm:$0xf] %vm25_vm1, %v1247_v0  ;;  %155 = vst.msk [vmem:[%s3352_s1 + $0x418] sm:$0xf] %vm25_vm1, %v1247_v0 }
  0x6f   :  { %153 = vst.msk [vmem:[%s3352_s1 + $0x408] sm:$0xff] %vm22_vm0, %v1247_v0  ;;  %154 = vst.msk [vmem:[%s3352_s1 + $0x410] sm:$0xff] %vm22_vm0, %v1247_v0 }
  0x70   :  { %156 = vst.msk [vmem:[%s3352_s1 + $0x420] sm:$0xff] %vm22_vm0, %v1247_v0  ;;  %157 = vst.msk [vmem:[%s3352_s1 + $0x428] sm:$0xff] %vm22_vm0, %v1247_v0  ;;  %662 = vrot.lane.b32.xlu1 %v359_v47, %s1248_s25  ;;  %660 = vrot.lane.b32.xlu0 %v358_v48, %s1248_s25  ;;  %v397_v47 = vld [vmem:[#allocation2 + $0x2a8] sm:$0xff]  ;;  %v396_v48 = vld [vmem:[#allocation2 + $0x2a0] sm:$0xff] }
  0x71   :  { %158 = vst.msk [vmem:[%s3352_s1 + $0x430] sm:$0xf] %vm25_vm1, %v1247_v0  ;;  %161 = vst.msk [vmem:[%s3352_s1 + $0x448] sm:$0xf] %vm25_vm1, %v1247_v0 }
  0x72   :  { %159 = vst.msk [vmem:[%s3352_s1 + $0x438] sm:$0xff] %vm22_vm0, %v1247_v0  ;;  %160 = vst.msk [vmem:[%s3352_s1 + $0x440] sm:$0xff] %vm22_vm0, %v1247_v0 }
  0x73   :  { %174 = vst.msk [vmem:[%s3352_s1 + $0x4b0] sm:$0xff] %vm22_vm0, %v1247_v0  ;;  %175 = vst.msk [vmem:[%s3352_s1 + $0x4b8] sm:$0xff] %vm22_vm0, %v1247_v0 }
  0x74   :  { %176 = vst.msk [vmem:[%s3352_s1 + $0x4c0] sm:$0xf] %vm25_vm1, %v1247_v0  ;;  %179 = vst.msk [vmem:[%s3352_s1 + $0x4d8] sm:$0xf] %vm25_vm1, %v1247_v0  ;;  %666 = vrot.lane.b32.xlu1 %v361_v49, %s1248_s25  ;;  %664 = vrot.lane.b32.xlu0 %v360_v50, %s1248_s25 }
  0x75   :  { %177 = vst.msk [vmem:[%s3352_s1 + $0x4c8] sm:$0xff] %vm22_vm0, %v1247_v0  ;;  %178 = vst.msk [vmem:[%s3352_s1 + $0x4d0] sm:$0xff] %vm22_vm0, %v1247_v0 }
  0x76   :  { %180 = vst.msk [vmem:[%s3352_s1 + $0x4e0] sm:$0xff] %vm22_vm0, %v1247_v0  ;;  %181 = vst.msk [vmem:[%s3352_s1 + $0x4e8] sm:$0xff] %vm22_vm0, %v1247_v0 }
  0x77   :  { %182 = vst.msk [vmem:[%s3352_s1 + $0x4f0] sm:$0xf] %vm25_vm1, %v1247_v0  ;;  %185 = vst.msk [vmem:[%s3352_s1 + $0x508] sm:$0xf] %vm25_vm1, %v1247_v0 }
  0x78   :  { %183 = vst.msk [vmem:[%s3352_s1 + $0x4f8] sm:$0xff] %vm22_vm0, %v1247_v0  ;;  %184 = vst.msk [vmem:[%s3352_s1 + $0x500] sm:$0xff] %vm22_vm0, %v1247_v0  ;;  %670 = vrot.lane.b32.xlu1 %v363_v51, %s1248_s25  ;;  %668 = vrot.lane.b32.xlu0 %v362_v52, %s1248_s25  ;;  %v399_v51 = vld [vmem:[#allocation2 + $0x2b8] sm:$0xff]  ;;  %v398_v52 = vld [vmem:[#allocation2 + $0x2b0] sm:$0xff] }
  0x79   :  { %186 = vst.msk [vmem:[%s3352_s1 + $0x510] sm:$0xff] %vm22_vm0, %v1247_v0  ;;  %187 = vst.msk [vmem:[%s3352_s1 + $0x518] sm:$0xff] %vm22_vm0, %v1247_v0 }
  0x7a   :  { %188 = vst.msk [vmem:[%s3352_s1 + $0x520] sm:$0xf] %vm25_vm1, %v1247_v0  ;;  %191 = vst.msk [vmem:[%s3352_s1 + $0x538] sm:$0xf] %vm25_vm1, %v1247_v0 }
  0x7b   :  { %189 = vst.msk [vmem:[%s3352_s1 + $0x528] sm:$0xff] %vm22_vm0, %v1247_v0  ;;  %190 = vst.msk [vmem:[%s3352_s1 + $0x530] sm:$0xff] %vm22_vm0, %v1247_v0 }
  0x7c   :  { %192 = vst.msk [vmem:[%s3352_s1 + $0x540] sm:$0xff] %vm22_vm0, %v1247_v0  ;;  %193 = vst.msk [vmem:[%s3352_s1 + $0x548] sm:$0xff] %vm22_vm0, %v1247_v0  ;;  %674 = vrot.lane.b32.xlu1 %v365_v53, %s1248_s25  ;;  %672 = vrot.lane.b32.xlu0 %v364_v54, %s1248_s25 }
  0x7d   :  { %194 = vst.msk [vmem:[%s3352_s1 + $0x550] sm:$0xf] %vm25_vm1, %v1247_v0  ;;  %197 = vst.msk [vmem:[%s3352_s1 + $0x568] sm:$0xf] %vm25_vm1, %v1247_v0 }
  0x7e   :  { %195 = vst.msk [vmem:[%s3352_s1 + $0x558] sm:$0xff] %vm22_vm0, %v1247_v0  ;;  %196 = vst.msk [vmem:[%s3352_s1 + $0x560] sm:$0xff] %vm22_vm0, %v1247_v0 }
  0x7f   :  { %210 = vst.msk [vmem:[%s3352_s1 + $0x5d0] sm:$0xff] %vm22_vm0, %v1247_v0  ;;  %211 = vst.msk [vmem:[%s3352_s1 + $0x5d8] sm:$0xff] %vm22_vm0, %v1247_v0 }
  0x80   :  { %212 = vst.msk [vmem:[%s3352_s1 + $0x5e0] sm:$0xf] %vm25_vm1, %v1247_v0  ;;  %215 = vst.msk [vmem:[%s3352_s1 + $0x5f8] sm:$0xf] %vm25_vm1, %v1247_v0  ;;  %678 = vrot.lane.b32.xlu1 %v367_v55, %s1248_s25  ;;  %676 = vrot.lane.b32.xlu0 %v366_v56, %s1248_s25  ;;  %v401_v55 = vld [vmem:[#allocation2 + $0x2c8] sm:$0xff]  ;;  %v400_v56 = vld [vmem:[#allocation2 + $0x2c0] sm:$0xff] }
  0x81   :  { %213 = vst.msk [vmem:[%s3352_s1 + $0x5e8] sm:$0xff] %vm22_vm0, %v1247_v0  ;;  %214 = vst.msk [vmem:[%s3352_s1 + $0x5f0] sm:$0xff] %vm22_vm0, %v1247_v0 }
  0x82   :  { %216 = vst.msk [vmem:[%s3352_s1 + $0x600] sm:$0xff] %vm22_vm0, %v1247_v0  ;;  %217 = vst.msk [vmem:[%s3352_s1 + $0x608] sm:$0xff] %vm22_vm0, %v1247_v0 }
  0x83   :  { %218 = vst.msk [vmem:[%s3352_s1 + $0x610] sm:$0xf] %vm25_vm1, %v1247_v0  ;;  %221 = vst.msk [vmem:[%s3352_s1 + $0x628] sm:$0xf] %vm25_vm1, %v1247_v0 }
  0x84   :  { %219 = vst.msk [vmem:[%s3352_s1 + $0x618] sm:$0xff] %vm22_vm0, %v1247_v0  ;;  %220 = vst.msk [vmem:[%s3352_s1 + $0x620] sm:$0xff] %vm22_vm0, %v1247_v0  ;;  %682 = vrot.lane.b32.xlu1 %v369_v57, %s1248_s25  ;;  %680 = vrot.lane.b32.xlu0 %v368_v58, %s1248_s25 }
  0x85   :  { %222 = vst.msk [vmem:[%s3352_s1 + $0x630] sm:$0xff] %vm22_vm0, %v1247_v0  ;;  %223 = vst.msk [vmem:[%s3352_s1 + $0x638] sm:$0xff] %vm22_vm0, %v1247_v0 }
  0x86   :  { %224 = vst.msk [vmem:[%s3352_s1 + $0x640] sm:$0xf] %vm25_vm1, %v1247_v0  ;;  %227 = vst.msk [vmem:[%s3352_s1 + $0x658] sm:$0xf] %vm25_vm1, %v1247_v0  ;;  %v573_v61 = vpop.permute.xlu1 %572  ;;  %v569_v62 = vpop.permute.xlu0 %568 }
  0x87   :  { %225 = vst.msk [vmem:[%s3352_s1 + $0x648] sm:$0xff] %vm22_vm0, %v1247_v0  ;;  %226 = vst.msk [vmem:[%s3352_s1 + $0x650] sm:$0xff] %vm22_vm0, %v1247_v0 }
  0x88   :  { %228 = vst.msk [vmem:[%s3352_s1 + $0x660] sm:$0xff] %vm22_vm0, %v1247_v0  ;;  %229 = vst.msk [vmem:[%s3352_s1 + $0x668] sm:$0xff] %vm22_vm0, %v1247_v0  ;;  %686 = vrot.lane.b32.xlu1 %v371_v59, %s1248_s25  ;;  %684 = vrot.lane.b32.xlu0 %v370_v60, %s1248_s25  ;;  %v403_v59 = vld [vmem:[#allocation2 + $0x2d8] sm:$0xff]  ;;  %v402_v60 = vld [vmem:[#allocation2 + $0x2d0] sm:$0xff] }
  0x89   :  { %230 = vst.msk [vmem:[%s3352_s1 + $0x670] sm:$0xf] %vm25_vm1, %v1247_v0  ;;  %233 = vst.msk [vmem:[%s3352_s1 + $0x688] sm:$0xf] %vm25_vm1, %v1247_v0 }
  0x8a   :  { %231 = vst.msk [vmem:[%s3352_s1 + $0x678] sm:$0xff] %vm22_vm0, %v1247_v0  ;;  %232 = vst.msk [vmem:[%s3352_s1 + $0x680] sm:$0xff] %vm22_vm0, %v1247_v0  ;;  %v575_v1 = vpop.permute.xlu1 %574  ;;  %v571_v2 = vpop.permute.xlu0 %570 }
  0x8b   :  { %246 = vst.msk [vmem:[%s3352_s1 + $0x6f0] sm:$0xff] %vm22_vm0, %v1247_v0  ;;  %247 = vst.msk [vmem:[%s3352_s1 + $0x6f8] sm:$0xff] %vm22_vm0, %v1247_v0 }
  0x8c   :  { %248 = vst.msk [vmem:[%s3352_s1 + $0x700] sm:$0xf] %vm25_vm1, %v1247_v0  ;;  %251 = vst.msk [vmem:[%s3352_s1 + $0x718] sm:$0xf] %vm25_vm1, %v1247_v0  ;;  %690 = vrot.lane.b32.xlu1 %v373_v63, %s1248_s25  ;;  %v405_v63 = vld [vmem:[#allocation2 + $0x2e8] sm:$0xff] }
  0x8d   :  { %249 = vst.msk [vmem:[%s3352_s1 + $0x708] sm:$0xff] %vm22_vm0, %v1247_v0  ;;  %250 = vst.msk [vmem:[%s3352_s1 + $0x710] sm:$0xff] %vm22_vm0, %v1247_v0 }
  0x8e   :  { %252 = vst.msk [vmem:[%s3352_s1 + $0x720] sm:$0xff] %vm22_vm0, %v1247_v0  ;;  %253 = vst.msk [vmem:[%s3352_s1 + $0x728] sm:$0xff] %vm22_vm0, %v1247_v0  ;;  %v579_v5 = vpop.permute.xlu1 %578  ;;  %v577_v6 = vpop.permute.xlu0 %576 }
  0x8f   :  { %254 = vst.msk [vmem:[%s3352_s1 + $0x730] sm:$0xf] %vm25_vm1, %v1247_v0  ;;  %257 = vst.msk [vmem:[%s3352_s1 + $0x748] sm:$0xf] %vm25_vm1, %v1247_v0 }
  0x90   :  { %255 = vst.msk [vmem:[%s3352_s1 + $0x738] sm:$0xff] %vm22_vm0, %v1247_v0  ;;  %256 = vst.msk [vmem:[%s3352_s1 + $0x740] sm:$0xff] %vm22_vm0, %v1247_v0  ;;  %694 = vrot.lane.b32.xlu1 %v375_v3, %s1248_s25  ;;  %v407_v3 = vld [vmem:[#allocation2 + $0x2f8] sm:$0xff] }
  0x91   :  { %258 = vst.msk [vmem:[%s3352_s1 + $0x750] sm:$0xff] %vm22_vm0, %v1247_v0  ;;  %259 = vst.msk [vmem:[%s3352_s1 + $0x758] sm:$0xff] %vm22_vm0, %v1247_v0 }
  0x92   :  { %260 = vst.msk [vmem:[%s3352_s1 + $0x760] sm:$0xf] %vm25_vm1, %v1247_v0  ;;  %263 = vst.msk [vmem:[%s3352_s1 + $0x778] sm:$0xf] %vm25_vm1, %v1247_v0  ;;  %v583_v9 = vpop.permute.xlu1 %582  ;;  %v581_v10 = vpop.permute.xlu0 %580 }
  0x93   :  { %261 = vst.msk [vmem:[%s3352_s1 + $0x768] sm:$0xff] %vm22_vm0, %v1247_v0  ;;  %262 = vst.msk [vmem:[%s3352_s1 + $0x770] sm:$0xff] %vm22_vm0, %v1247_v0 }
  0x94   :  { %264 = vst.msk [vmem:[%s3352_s1 + $0x780] sm:$0xff] %vm22_vm0, %v1247_v0  ;;  %265 = vst.msk [vmem:[%s3352_s1 + $0x788] sm:$0xff] %vm22_vm0, %v1247_v0  ;;  %698 = vrot.lane.b32.xlu1 %v377_v7, %s1248_s25  ;;  %v409_v7 = vld [vmem:[#allocation2 + $0x308] sm:$0xff] }
  0x95   :  { %266 = vst.msk [vmem:[%s3352_s1 + $0x790] sm:$0xf] %vm25_vm1, %v1247_v0  ;;  %269 = vst.msk [vmem:[%s3352_s1 + $0x7a8] sm:$0xf] %vm25_vm1, %v1247_v0 }
  0x96   :  { %267 = vst.msk [vmem:[%s3352_s1 + $0x798] sm:$0xff] %vm22_vm0, %v1247_v0  ;;  %268 = vst.msk [vmem:[%s3352_s1 + $0x7a0] sm:$0xff] %vm22_vm0, %v1247_v0  ;;  %v587_v13 = vpop.permute.xlu1 %586  ;;  %v585_v14 = vpop.permute.xlu0 %584 }
  0x97   :  { %282 = vst.msk [vmem:[%s3352_s1 + $0x810] sm:$0xff] %vm22_vm0, %v1247_v0  ;;  %283 = vst.msk [vmem:[%s3352_s1 + $0x818] sm:$0xff] %vm22_vm0, %v1247_v0 }
  0x98   :  { %284 = vst.msk [vmem:[%s3352_s1 + $0x820] sm:$0xf] %vm25_vm1, %v1247_v0  ;;  %287 = vst.msk [vmem:[%s3352_s1 + $0x838] sm:$0xf] %vm25_vm1, %v1247_v0  ;;  %702 = vrot.lane.b32.xlu1 %v379_v11, %s1248_s25  ;;  %v411_v11 = vld [vmem:[#allocation2 + $0x318] sm:$0xff] }
  0x99   :  { %285 = vst.msk [vmem:[%s3352_s1 + $0x828] sm:$0xff] %vm22_vm0, %v1247_v0  ;;  %286 = vst.msk [vmem:[%s3352_s1 + $0x830] sm:$0xff] %vm22_vm0, %v1247_v0 }
  0x9a   :  { %288 = vst.msk [vmem:[%s3352_s1 + $0x840] sm:$0xff] %vm22_vm0, %v1247_v0  ;;  %289 = vst.msk [vmem:[%s3352_s1 + $0x848] sm:$0xff] %vm22_vm0, %v1247_v0  ;;  %v591_v17 = vpop.permute.xlu1 %590  ;;  %v589_v18 = vpop.permute.xlu0 %588 }
  0x9b   :  { %290 = vst.msk [vmem:[%s3352_s1 + $0x850] sm:$0xf] %vm25_vm1, %v1247_v0  ;;  %293 = vst.msk [vmem:[%s3352_s1 + $0x868] sm:$0xf] %vm25_vm1, %v1247_v0 }
  0x9c   :  { %291 = vst.msk [vmem:[%s3352_s1 + $0x858] sm:$0xff] %vm22_vm0, %v1247_v0  ;;  %292 = vst.msk [vmem:[%s3352_s1 + $0x860] sm:$0xff] %vm22_vm0, %v1247_v0  ;;  %706 = vrot.lane.b32.xlu1 %v381_v15, %s1248_s25  ;;  %v413_v15 = vld [vmem:[#allocation2 + $0x328] sm:$0xff] }
  0x9d   :  { %294 = vst.msk [vmem:[%s3352_s1 + $0x870] sm:$0xff] %vm22_vm0, %v1247_v0  ;;  %295 = vst.msk [vmem:[%s3352_s1 + $0x878] sm:$0xff] %vm22_vm0, %v1247_v0 }
  0x9e   :  { %296 = vst.msk [vmem:[%s3352_s1 + $0x880] sm:$0xf] %vm25_vm1, %v1247_v0  ;;  %299 = vst.msk [vmem:[%s3352_s1 + $0x898] sm:$0xf] %vm25_vm1, %v1247_v0  ;;  %v595_v21 = vpop.permute.xlu1 %594  ;;  %v593_v22 = vpop.permute.xlu0 %592 }
  0x9f   :  { %297 = vst.msk [vmem:[%s3352_s1 + $0x888] sm:$0xff] %vm22_vm0, %v1247_v0  ;;  %298 = vst.msk [vmem:[%s3352_s1 + $0x890] sm:$0xff] %vm22_vm0, %v1247_v0 }
  0xa0   :  { %300 = vst.msk [vmem:[%s3352_s1 + $0x8a0] sm:$0xff] %vm22_vm0, %v1247_v0  ;;  %301 = vst.msk [vmem:[%s3352_s1 + $0x8a8] sm:$0xff] %vm22_vm0, %v1247_v0  ;;  %710 = vrot.lane.b32.xlu1 %v383_v19, %s1248_s25  ;;  %v415_v19 = vld [vmem:[#allocation2 + $0x338] sm:$0xff] }
  0xa1   :  { %302 = vst.msk [vmem:[%s3352_s1 + $0x8b0] sm:$0xf] %vm25_vm1, %v1247_v0  ;;  %305 = vst.msk [vmem:[%s3352_s1 + $0x8c8] sm:$0xf] %vm25_vm1, %v1247_v0 }
  0xa2   :  { %303 = vst.msk [vmem:[%s3352_s1 + $0x8b8] sm:$0xff] %vm22_vm0, %v1247_v0  ;;  %304 = vst.msk [vmem:[%s3352_s1 + $0x8c0] sm:$0xff] %vm22_vm0, %v1247_v0  ;;  %v372_v0 = vld [vmem:[#allocation2 + $0x1e0] sm:$0xff]  ;;  %v599_v25 = vpop.permute.xlu1 %598  ;;  %v597_v26 = vpop.permute.xlu0 %596 }
  0xa3   :  { %1089 = vst.msk [vmem:[%s3352_s1 + $0x4a] sm:$0xff] %vm953_vm2, %v573_v61  ;;  %1087 = vst.msk [vmem:[%s3352_s1 + $0x32] sm:$0xff] %vm953_vm2, %v569_v62  ;;  %688 = vrot.lane.b32.xlu0 %v372_v0, %s1248_s25  ;;  %v404_v0 = vld [vmem:[#allocation2 + $0x2e0] sm:$0xff] }
  0xa4   :  { %1090 = vst.msk [vmem:[%s3352_s1 + $0x52] sm:$0xff] %vm953_vm2, %v575_v1  ;;  %1088 = vst.msk [vmem:[%s3352_s1 + $0x3a] sm:$0xff] %vm953_vm2, %v571_v2  ;;  %714 = vrot.lane.b32.xlu1 %v385_v23, %s1248_s25  ;;  %v417_v23 = vld [vmem:[#allocation2 + $0x348] sm:$0xff] }
  0xa5   :  { %1092 = vst.msk [vmem:[%s3352_s1 + $0x6a] sm:$0xff] %vm953_vm2, %v579_v5  ;;  %1091 = vst.msk [vmem:[%s3352_s1 + $0x62] sm:$0xff] %vm953_vm2, %v577_v6 }
  0xa6   :  { %1094 = vst.msk [vmem:[%s3352_s1 + $0x82] sm:$0xff] %vm953_vm2, %v583_v9  ;;  %1093 = vst.msk [vmem:[%s3352_s1 + $0x7a] sm:$0xff] %vm953_vm2, %v581_v10  ;;  %v603_v29 = vpop.permute.xlu1 %602  ;;  %v601_v30 = vpop.permute.xlu0 %600 }
  0xa7   :  { %692 = vrot.lane.b32.xlu0 %v374_v4, %s1248_s25  ;;  %1096 = vst.msk [vmem:[%s3352_s1 + $0x9a] sm:$0xff] %vm953_vm2, %v587_v13  ;;  %1095 = vst.msk [vmem:[%s3352_s1 + $0x92] sm:$0xff] %vm953_vm2, %v585_v14  ;;  %v406_v4 = vld [vmem:[#allocation2 + $0x2f0] sm:$0xff] }
  0xa8   :  { %1098 = vst.msk [vmem:[%s3352_s1 + $0xb2] sm:$0xff] %vm953_vm2, %v591_v17  ;;  %1097 = vst.msk [vmem:[%s3352_s1 + $0xaa] sm:$0xff] %vm953_vm2, %v589_v18  ;;  %718 = vrot.lane.b32.xlu1 %v387_v27, %s1248_s25  ;;  %v419_v27 = vld [vmem:[#allocation2 + $0x358] sm:$0xff] }
  0xa9   :  { %1100 = vst.msk [vmem:[%s3352_s1 + $0xca] sm:$0xff] %vm953_vm2, %v595_v21  ;;  %1099 = vst.msk [vmem:[%s3352_s1 + $0xc2] sm:$0xff] %vm953_vm2, %v593_v22 }
  0xaa   :  { %1102 = vst.msk [vmem:[%s3352_s1 + $0xe2] sm:$0xff] %vm953_vm2, %v599_v25  ;;  %1101 = vst.msk [vmem:[%s3352_s1 + $0xda] sm:$0xff] %vm953_vm2, %v597_v26  ;;  %v607_v33 = vpop.permute.xlu1 %606  ;;  %v605_v34 = vpop.permute.xlu0 %604 }
  0xab   :  { %696 = vrot.lane.b32.xlu0 %v376_v8, %s1248_s25  ;;  %1104 = vst.msk [vmem:[%s3352_s1 + $0x15a] sm:$0xff] %vm953_vm2, %v603_v29  ;;  %1103 = vst.msk [vmem:[%s3352_s1 + $0x152] sm:$0xff] %vm953_vm2, %v601_v30  ;;  %v408_v8 = vld [vmem:[#allocation2 + $0x300] sm:$0xff] }
  0xac   :  { %1106 = vst.msk [vmem:[%s3352_s1 + $0x172] sm:$0xff] %vm953_vm2, %v607_v33  ;;  %1105 = vst.msk [vmem:[%s3352_s1 + $0x16a] sm:$0xff] %vm953_vm2, %v605_v34  ;;  %722 = vrot.lane.b32.xlu1 %v389_v31, %s1248_s25  ;;  %v421_v31 = vld [vmem:[#allocation2 + $0x368] sm:$0xff] }
  0xae   :  { %v611_v37 = vpop.permute.xlu1 %610  ;;  %v609_v38 = vpop.permute.xlu0 %608 }
  0xaf   :  { %700 = vrot.lane.b32.xlu0 %v378_v12, %s1248_s25  ;;  %1108 = vst.msk [vmem:[%s3352_s1 + $0x18a] sm:$0xff] %vm953_vm2, %v611_v37  ;;  %1107 = vst.msk [vmem:[%s3352_s1 + $0x182] sm:$0xff] %vm953_vm2, %v609_v38  ;;  %v410_v12 = vld [vmem:[#allocation2 + $0x310] sm:$0xff] }
  0xb0   :  { %726 = vrot.lane.b32.xlu1 %v391_v35, %s1248_s25  ;;  %v423_v35 = vld [vmem:[#allocation2 + $0x378] sm:$0xff] }
  0xb2   :  { %v615_v41 = vpop.permute.xlu1 %614  ;;  %v613_v42 = vpop.permute.xlu0 %612 }
  0xb3   :  { %704 = vrot.lane.b32.xlu0 %v380_v16, %s1248_s25  ;;  %1110 = vst.msk [vmem:[%s3352_s1 + $0x1a2] sm:$0xff] %vm953_vm2, %v615_v41  ;;  %1109 = vst.msk [vmem:[%s3352_s1 + $0x19a] sm:$0xff] %vm953_vm2, %v613_v42  ;;  %v412_v16 = vld [vmem:[#allocation2 + $0x320] sm:$0xff] }
  0xb4   :  { %730 = vrot.lane.b32.xlu1 %v393_v39, %s1248_s25  ;;  %v425_v39 = vld [vmem:[#allocation2 + $0x388] sm:$0xff] }
  0xb6   :  { %v619_v45 = vpop.permute.xlu1 %618  ;;  %v617_v46 = vpop.permute.xlu0 %616 }
  0xb7   :  { %708 = vrot.lane.b32.xlu0 %v382_v20, %s1248_s25  ;;  %1112 = vst.msk [vmem:[%s3352_s1 + $0x1ba] sm:$0xff] %vm953_vm2, %v619_v45  ;;  %1111 = vst.msk [vmem:[%s3352_s1 + $0x1b2] sm:$0xff] %vm953_vm2, %v617_v46  ;;  %v414_v20 = vld [vmem:[#allocation2 + $0x330] sm:$0xff] }
  0xb8   :  { %734 = vrot.lane.b32.xlu1 %v395_v43, %s1248_s25  ;;  %v427_v43 = vld [vmem:[#allocation2 + $0x398] sm:$0xff] }
  0xba   :  { %v623_v49 = vpop.permute.xlu1 %622  ;;  %v621_v50 = vpop.permute.xlu0 %620 }
  0xbb   :  { %712 = vrot.lane.b32.xlu0 %v384_v24, %s1248_s25  ;;  %1114 = vst.msk [vmem:[%s3352_s1 + $0x1d2] sm:$0xff] %vm953_vm2, %v623_v49  ;;  %1113 = vst.msk [vmem:[%s3352_s1 + $0x1ca] sm:$0xff] %vm953_vm2, %v621_v50  ;;  %v416_v24 = vld [vmem:[#allocation2 + $0x340] sm:$0xff] }
  0xbc   :  { %738 = vrot.lane.b32.xlu1 %v397_v47, %s1248_s25  ;;  %v429_v47 = vld [vmem:[#allocation2 + $0x3a8] sm:$0xff] }
  0xbe   :  { %v627_v53 = vpop.permute.xlu1 %626  ;;  %v625_v54 = vpop.permute.xlu0 %624 }
  0xbf   :  { %716 = vrot.lane.b32.xlu0 %v386_v28, %s1248_s25  ;;  %1116 = vst.msk [vmem:[%s3352_s1 + $0x1ea] sm:$0xff] %vm953_vm2, %v627_v53  ;;  %1115 = vst.msk [vmem:[%s3352_s1 + $0x1e2] sm:$0xff] %vm953_vm2, %v625_v54  ;;  %v418_v28 = vld [vmem:[#allocation2 + $0x350] sm:$0xff] }
  0xc0   :  { %742 = vrot.lane.b32.xlu1 %v399_v51, %s1248_s25  ;;  %v431_v51 = vld [vmem:[#allocation2 + $0x3b8] sm:$0xff] }
  0xc2   :  { %v631_v57 = vpop.permute.xlu1 %630  ;;  %v629_v58 = vpop.permute.xlu0 %628 }
  0xc3   :  { %720 = vrot.lane.b32.xlu0 %v388_v32, %s1248_s25  ;;  %1118 = vst.msk [vmem:[%s3352_s1 + $0x202] sm:$0xff] %vm953_vm2, %v631_v57  ;;  %1117 = vst.msk [vmem:[%s3352_s1 + $0x1fa] sm:$0xff] %vm953_vm2, %v629_v58  ;;  %v420_v32 = vld [vmem:[#allocation2 + $0x360] sm:$0xff] }
  0xc4   :  { %746 = vrot.lane.b32.xlu1 %v401_v55, %s1248_s25  ;;  %v433_v55 = vld [vmem:[#allocation2 + $0x3c8] sm:$0xff] }
  0xc6   :  { %v635_v61 = vpop.permute.xlu1 %634  ;;  %v633_v62 = vpop.permute.xlu0 %632 }
  0xc7   :  { %724 = vrot.lane.b32.xlu0 %v390_v36, %s1248_s25  ;;  %1120 = vst.msk [vmem:[%s3352_s1 + $0x27a] sm:$0xff] %vm953_vm2, %v635_v61  ;;  %1119 = vst.msk [vmem:[%s3352_s1 + $0x272] sm:$0xff] %vm953_vm2, %v633_v62  ;;  %v422_v36 = vld [vmem:[#allocation2 + $0x370] sm:$0xff] }
  0xc8   :  { %750 = vrot.lane.b32.xlu1 %v403_v59, %s1248_s25  ;;  %v435_v59 = vld [vmem:[#allocation2 + $0x3d8] sm:$0xff] }
  0xca   :  { %v639_v1 = vpop.permute.xlu1 %638  ;;  %v637_v2 = vpop.permute.xlu0 %636 }
  0xcb   :  { %728 = vrot.lane.b32.xlu0 %v392_v40, %s1248_s25  ;;  %1122 = vst.msk [vmem:[%s3352_s1 + $0x292] sm:$0xff] %vm953_vm2, %v639_v1  ;;  %1121 = vst.msk [vmem:[%s3352_s1 + $0x28a] sm:$0xff] %vm953_vm2, %v637_v2  ;;  %v424_v40 = vld [vmem:[#allocation2 + $0x380] sm:$0xff] }
  0xcc   :  { %754 = vrot.lane.b32.xlu1 %v405_v63, %s1248_s25  ;;  %v437_v63 = vld [vmem:[#allocation2 + $0x3e8] sm:$0xff] }
  0xce   :  { %v643_v5 = vpop.permute.xlu1 %642  ;;  %v641_v6 = vpop.permute.xlu0 %640 }
  0xcf   :  { %732 = vrot.lane.b32.xlu0 %v394_v44, %s1248_s25  ;;  %1124 = vst.msk [vmem:[%s3352_s1 + $0x2aa] sm:$0xff] %vm953_vm2, %v643_v5  ;;  %1123 = vst.msk [vmem:[%s3352_s1 + $0x2a2] sm:$0xff] %vm953_vm2, %v641_v6  ;;  %v426_v44 = vld [vmem:[#allocation2 + $0x390] sm:$0xff] }
  0xd0   :  { %758 = vrot.lane.b32.xlu1 %v407_v3, %s1248_s25  ;;  %v439_v3 = vld [vmem:[#allocation2 + $0x3f8] sm:$0xff] }
  0xd2   :  { %v647_v9 = vpop.permute.xlu1 %646  ;;  %v645_v10 = vpop.permute.xlu0 %644 }
  0xd3   :  { %736 = vrot.lane.b32.xlu0 %v396_v48, %s1248_s25  ;;  %1126 = vst.msk [vmem:[%s3352_s1 + $0x2c2] sm:$0xff] %vm953_vm2, %v647_v9  ;;  %1125 = vst.msk [vmem:[%s3352_s1 + $0x2ba] sm:$0xff] %vm953_vm2, %v645_v10  ;;  %v428_v48 = vld [vmem:[#allocation2 + $0x3a0] sm:$0xff] }
  0xd4   :  { %762 = vrot.lane.b32.xlu1 %v409_v7, %s1248_s25 }
  0xd6   :  { %v651_v13 = vpop.permute.xlu1 %650  ;;  %v649_v14 = vpop.permute.xlu0 %648 }
  0xd7   :  { %740 = vrot.lane.b32.xlu0 %v398_v52, %s1248_s25  ;;  %1128 = vst.msk [vmem:[%s3352_s1 + $0x2da] sm:$0xff] %vm953_vm2, %v651_v13  ;;  %1127 = vst.msk [vmem:[%s3352_s1 + $0x2d2] sm:$0xff] %vm953_vm2, %v649_v14  ;;  %v430_v52 = vld [vmem:[#allocation2 + $0x3b0] sm:$0xff] }
  0xd8   :  { %766 = vrot.lane.b32.xlu1 %v411_v11, %s1248_s25 }
  0xda   :  { %v655_v17 = vpop.permute.xlu1 %654  ;;  %v653_v18 = vpop.permute.xlu0 %652 }
  0xdb   :  { %744 = vrot.lane.b32.xlu0 %v400_v56, %s1248_s25  ;;  %1130 = vst.msk [vmem:[%s3352_s1 + $0x2f2] sm:$0xff] %vm953_vm2, %v655_v17  ;;  %1129 = vst.msk [vmem:[%s3352_s1 + $0x2ea] sm:$0xff] %vm953_vm2, %v653_v18  ;;  %v432_v56 = vld [vmem:[#allocation2 + $0x3c0] sm:$0xff] }
  0xdc   :  { %770 = vrot.lane.b32.xlu1 %v413_v15, %s1248_s25 }
  0xde   :  { %v659_v21 = vpop.permute.xlu1 %658  ;;  %v657_v22 = vpop.permute.xlu0 %656 }
  0xdf   :  { %748 = vrot.lane.b32.xlu0 %v402_v60, %s1248_s25  ;;  %1132 = vst.msk [vmem:[%s3352_s1 + $0x30a] sm:$0xff] %vm953_vm2, %v659_v21  ;;  %1131 = vst.msk [vmem:[%s3352_s1 + $0x302] sm:$0xff] %vm953_vm2, %v657_v22  ;;  %v434_v60 = vld [vmem:[#allocation2 + $0x3d0] sm:$0xff] }
  0xe0   :  { %774 = vrot.lane.b32.xlu1 %v415_v19, %s1248_s25 }
  0xe2   :  { %v663_v25 = vpop.permute.xlu1 %662  ;;  %v661_v26 = vpop.permute.xlu0 %660 }
  0xe3   :  { %752 = vrot.lane.b32.xlu0 %v404_v0, %s1248_s25  ;;  %1134 = vst.msk [vmem:[%s3352_s1 + $0x322] sm:$0xff] %vm953_vm2, %v663_v25  ;;  %1133 = vst.msk [vmem:[%s3352_s1 + $0x31a] sm:$0xff] %vm953_vm2, %v661_v26  ;;  %v436_v0 = vld [vmem:[#allocation2 + $0x3e0] sm:$0xff] }
  0xe4   :  { %778 = vrot.lane.b32.xlu1 %v417_v23, %s1248_s25 }
  0xe6   :  { %v667_v29 = vpop.permute.xlu1 %666  ;;  %v665_v30 = vpop.permute.xlu0 %664 }
  0xe7   :  { %756 = vrot.lane.b32.xlu0 %v406_v4, %s1248_s25  ;;  %1136 = vst.msk [vmem:[%s3352_s1 + $0x39a] sm:$0xff] %vm953_vm2, %v667_v29  ;;  %1135 = vst.msk [vmem:[%s3352_s1 + $0x392] sm:$0xff] %vm953_vm2, %v665_v30  ;;  %v438_v4 = vld [vmem:[#allocation2 + $0x3f0] sm:$0xff] }
  0xe8   :  { %782 = vrot.lane.b32.xlu1 %v419_v27, %s1248_s25 }
  0xea   :  { %v671_v33 = vpop.permute.xlu1 %670  ;;  %v669_v34 = vpop.permute.xlu0 %668 }
  0xeb   :  { %760 = vrot.lane.b32.xlu0 %v408_v8, %s1248_s25  ;;  %1138 = vst.msk [vmem:[%s3352_s1 + $0x3b2] sm:$0xff] %vm953_vm2, %v671_v33  ;;  %1137 = vst.msk [vmem:[%s3352_s1 + $0x3aa] sm:$0xff] %vm953_vm2, %v669_v34 }
  0xec   :  { %786 = vrot.lane.b32.xlu1 %v421_v31, %s1248_s25 }
  0xee   :  { %v675_v37 = vpop.permute.xlu1 %674  ;;  %v673_v38 = vpop.permute.xlu0 %672 }
  0xef   :  { %764 = vrot.lane.b32.xlu0 %v410_v12, %s1248_s25  ;;  %1140 = vst.msk [vmem:[%s3352_s1 + $0x3ca] sm:$0xff] %vm953_vm2, %v675_v37  ;;  %1139 = vst.msk [vmem:[%s3352_s1 + $0x3c2] sm:$0xff] %vm953_vm2, %v673_v38 }
  0xf0   :  { %790 = vrot.lane.b32.xlu1 %v423_v35, %s1248_s25 }
  0xf2   :  { %v679_v41 = vpop.permute.xlu1 %678  ;;  %v677_v42 = vpop.permute.xlu0 %676 }
  0xf3   :  { %768 = vrot.lane.b32.xlu0 %v412_v16, %s1248_s25  ;;  %1142 = vst.msk [vmem:[%s3352_s1 + $0x3e2] sm:$0xff] %vm953_vm2, %v679_v41  ;;  %1141 = vst.msk [vmem:[%s3352_s1 + $0x3da] sm:$0xff] %vm953_vm2, %v677_v42 }
  0xf4   :  { %794 = vrot.lane.b32.xlu1 %v425_v39, %s1248_s25 }
  0xf6   :  { %v683_v45 = vpop.permute.xlu1 %682  ;;  %v681_v46 = vpop.permute.xlu0 %680 }
  0xf7   :  { %772 = vrot.lane.b32.xlu0 %v414_v20, %s1248_s25  ;;  %1144 = vst.msk [vmem:[%s3352_s1 + $0x3fa] sm:$0xff] %vm953_vm2, %v683_v45  ;;  %1143 = vst.msk [vmem:[%s3352_s1 + $0x3f2] sm:$0xff] %vm953_vm2, %v681_v46 }
  0xf8   :  { %798 = vrot.lane.b32.xlu1 %v427_v43, %s1248_s25 }
  0xfa   :  { %v687_v49 = vpop.permute.xlu1 %686  ;;  %v685_v50 = vpop.permute.xlu0 %684 }
  0xfb   :  { %776 = vrot.lane.b32.xlu0 %v416_v24, %s1248_s25  ;;  %1146 = vst.msk [vmem:[%s3352_s1 + $0x412] sm:$0xff] %vm953_vm2, %v687_v49  ;;  %1145 = vst.msk [vmem:[%s3352_s1 + $0x40a] sm:$0xff] %vm953_vm2, %v685_v50 }
  0xfc   :  { %802 = vrot.lane.b32.xlu1 %v429_v47, %s1248_s25 }
  0xfe   :  { %v691_v53 = vpop.permute.xlu1 %690 }
  0xff   :  { %780 = vrot.lane.b32.xlu0 %v418_v28, %s1248_s25  ;;  %1148 = vst.msk [vmem:[%s3352_s1 + $0x42a] sm:$0xff] %vm953_vm2, %v691_v53 }
 0x100   :  { %806 = vrot.lane.b32.xlu1 %v431_v51, %s1248_s25 }
 0x102   :  { %v695_v57 = vpop.permute.xlu1 %694 }
 0x103   :  { %784 = vrot.lane.b32.xlu0 %v420_v32, %s1248_s25  ;;  %1150 = vst.msk [vmem:[%s3352_s1 + $0x442] sm:$0xff] %vm953_vm2, %v695_v57 }
 0x104   :  { %810 = vrot.lane.b32.xlu1 %v433_v55, %s1248_s25 }
 0x106   :  { %v699_v61 = vpop.permute.xlu1 %698 }
 0x107   :  { %788 = vrot.lane.b32.xlu0 %v422_v36, %s1248_s25  ;;  %1152 = vst.msk [vmem:[%s3352_s1 + $0x4ba] sm:$0xff] %vm953_vm2, %v699_v61 }
 0x108   :  { %814 = vrot.lane.b32.xlu1 %v435_v59, %s1248_s25 }
 0x10a   :  { %v703_v1 = vpop.permute.xlu1 %702 }
 0x10b   :  { %792 = vrot.lane.b32.xlu0 %v424_v40, %s1248_s25  ;;  %1154 = vst.msk [vmem:[%s3352_s1 + $0x4d2] sm:$0xff] %vm953_vm2, %v703_v1 }
 0x10c   :  { %818 = vrot.lane.b32.xlu1 %v437_v63, %s1248_s25 }
 0x10e   :  { %v707_v5 = vpop.permute.xlu1 %706 }
 0x10f   :  { %796 = vrot.lane.b32.xlu0 %v426_v44, %s1248_s25  ;;  %1156 = vst.msk [vmem:[%s3352_s1 + $0x4ea] sm:$0xff] %vm953_vm2, %v707_v5 }
 0x110   :  { %822 = vrot.lane.b32.xlu1 %v439_v3, %s1248_s25 }
 0x112   :  { %v711_v7 = vpop.permute.xlu1 %710 }
 0x113   :  { %800 = vrot.lane.b32.xlu0 %v428_v48, %s1248_s25  ;;  %1158 = vst.msk [vmem:[%s3352_s1 + $0x502] sm:$0xff] %vm953_vm2, %v711_v7 }
 0x115   :  { %v689_v54 = vpop.permute.xlu0 %688 }
 0x116   :  { %1147 = vst.msk [vmem:[%s3352_s1 + $0x422] sm:$0xff] %vm953_vm2, %v689_v54  ;;  %v715_v9 = vpop.permute.xlu1 %714 }
 0x117   :  { %804 = vrot.lane.b32.xlu0 %v430_v52, %s1248_s25  ;;  %1160 = vst.msk [vmem:[%s3352_s1 + $0x51a] sm:$0xff] %vm953_vm2, %v715_v9 }
 0x119   :  { %v693_v58 = vpop.permute.xlu0 %692 }
 0x11a   :  { %1149 = vst.msk [vmem:[%s3352_s1 + $0x43a] sm:$0xff] %vm953_vm2, %v693_v58  ;;  %v719_v11 = vpop.permute.xlu1 %718 }
 0x11b   :  { %808 = vrot.lane.b32.xlu0 %v432_v56, %s1248_s25  ;;  %1162 = vst.msk [vmem:[%s3352_s1 + $0x532] sm:$0xff] %vm953_vm2, %v719_v11 }
 0x11d   :  { %v697_v62 = vpop.permute.xlu0 %696 }
 0x11e   :  { %1151 = vst.msk [vmem:[%s3352_s1 + $0x4b2] sm:$0xff] %vm953_vm2, %v697_v62  ;;  %v723_v13 = vpop.permute.xlu1 %722 }
 0x11f   :  { %812 = vrot.lane.b32.xlu0 %v434_v60, %s1248_s25  ;;  %1164 = vst.msk [vmem:[%s3352_s1 + $0x54a] sm:$0xff] %vm953_vm2, %v723_v13 }
 0x121   :  { %v701_v2 = vpop.permute.xlu0 %700 }
 0x122   :  { %1153 = vst.msk [vmem:[%s3352_s1 + $0x4ca] sm:$0xff] %vm953_vm2, %v701_v2  ;;  %v727_v15 = vpop.permute.xlu1 %726 }
 0x123   :  { %816 = vrot.lane.b32.xlu0 %v436_v0, %s1248_s25  ;;  %1166 = vst.msk [vmem:[%s3352_s1 + $0x562] sm:$0xff] %vm953_vm2, %v727_v15 }
 0x125   :  { %v705_v6 = vpop.permute.xlu0 %704 }
 0x126   :  { %1155 = vst.msk [vmem:[%s3352_s1 + $0x4e2] sm:$0xff] %vm953_vm2, %v705_v6  ;;  %v731_v17 = vpop.permute.xlu1 %730 }
 0x127   :  { %820 = vrot.lane.b32.xlu0 %v438_v4, %s1248_s25  ;;  %1168 = vst.msk [vmem:[%s3352_s1 + $0x5da] sm:$0xff] %vm953_vm2, %v731_v17 }
 0x129   :  { %v709_v8 = vpop.permute.xlu0 %708 }
 0x12a   :  { %1157 = vst.msk [vmem:[%s3352_s1 + $0x4fa] sm:$0xff] %vm953_vm2, %v709_v8  ;;  %v735_v19 = vpop.permute.xlu1 %734 }
 0x12b   :  { %1170 = vst.msk [vmem:[%s3352_s1 + $0x5f2] sm:$0xff] %vm953_vm2, %v735_v19 }
 0x12d   :  { %v713_v10 = vpop.permute.xlu0 %712 }
 0x12e   :  { %1159 = vst.msk [vmem:[%s3352_s1 + $0x512] sm:$0xff] %vm953_vm2, %v713_v10  ;;  %v739_v21 = vpop.permute.xlu1 %738 }
 0x12f   :  { %1172 = vst.msk [vmem:[%s3352_s1 + $0x60a] sm:$0xff] %vm953_vm2, %v739_v21 }
 0x131   :  { %v717_v12 = vpop.permute.xlu0 %716 }
 0x132   :  { %1161 = vst.msk [vmem:[%s3352_s1 + $0x52a] sm:$0xff] %vm953_vm2, %v717_v12  ;;  %v743_v23 = vpop.permute.xlu1 %742 }
 0x133   :  { %1174 = vst.msk [vmem:[%s3352_s1 + $0x622] sm:$0xff] %vm953_vm2, %v743_v23 }
 0x135   :  { %v721_v14 = vpop.permute.xlu0 %720 }
 0x136   :  { %1163 = vst.msk [vmem:[%s3352_s1 + $0x542] sm:$0xff] %vm953_vm2, %v721_v14  ;;  %v747_v25 = vpop.permute.xlu1 %746 }
 0x137   :  { %1176 = vst.msk [vmem:[%s3352_s1 + $0x63a] sm:$0xff] %vm953_vm2, %v747_v25 }
 0x139   :  { %v725_v16 = vpop.permute.xlu0 %724 }
 0x13a   :  { %1165 = vst.msk [vmem:[%s3352_s1 + $0x55a] sm:$0xff] %vm953_vm2, %v725_v16  ;;  %v751_v27 = vpop.permute.xlu1 %750 }
 0x13b   :  { %1178 = vst.msk [vmem:[%s3352_s1 + $0x652] sm:$0xff] %vm953_vm2, %v751_v27 }
 0x13d   :  { %v729_v18 = vpop.permute.xlu0 %728 }
 0x13e   :  { %1167 = vst.msk [vmem:[%s3352_s1 + $0x5d2] sm:$0xff] %vm953_vm2, %v729_v18  ;;  %v755_v29 = vpop.permute.xlu1 %754 }
 0x13f   :  { %1180 = vst.msk [vmem:[%s3352_s1 + $0x66a] sm:$0xff] %vm953_vm2, %v755_v29 }
 0x141   :  { %v733_v20 = vpop.permute.xlu0 %732 }
 0x142   :  { %1169 = vst.msk [vmem:[%s3352_s1 + $0x5ea] sm:$0xff] %vm953_vm2, %v733_v20  ;;  %v759_v31 = vpop.permute.xlu1 %758 }
 0x143   :  { %1182 = vst.msk [vmem:[%s3352_s1 + $0x682] sm:$0xff] %vm953_vm2, %v759_v31 }
 0x145   :  { %v737_v22 = vpop.permute.xlu0 %736 }
 0x146   :  { %1171 = vst.msk [vmem:[%s3352_s1 + $0x602] sm:$0xff] %vm953_vm2, %v737_v22  ;;  %v763_v33 = vpop.permute.xlu1 %762 }
 0x147   :  { %1184 = vst.msk [vmem:[%s3352_s1 + $0x6fa] sm:$0xff] %vm953_vm2, %v763_v33 }
 0x149   :  { %v741_v24 = vpop.permute.xlu0 %740 }
 0x14a   :  { %1173 = vst.msk [vmem:[%s3352_s1 + $0x61a] sm:$0xff] %vm953_vm2, %v741_v24  ;;  %v767_v35 = vpop.permute.xlu1 %766 }
 0x14b   :  { %1186 = vst.msk [vmem:[%s3352_s1 + $0x712] sm:$0xff] %vm953_vm2, %v767_v35 }
 0x14d   :  { %v745_v26 = vpop.permute.xlu0 %744 }
 0x14e   :  { %1175 = vst.msk [vmem:[%s3352_s1 + $0x632] sm:$0xff] %vm953_vm2, %v745_v26  ;;  %v771_v37 = vpop.permute.xlu1 %770 }
 0x14f   :  { %1188 = vst.msk [vmem:[%s3352_s1 + $0x72a] sm:$0xff] %vm953_vm2, %v771_v37 }
 0x151   :  { %v749_v28 = vpop.permute.xlu0 %748 }
 0x152   :  { %1177 = vst.msk [vmem:[%s3352_s1 + $0x64a] sm:$0xff] %vm953_vm2, %v749_v28  ;;  %v775_v39 = vpop.permute.xlu1 %774 }
 0x153   :  { %1190 = vst.msk [vmem:[%s3352_s1 + $0x742] sm:$0xff] %vm953_vm2, %v775_v39 }
 0x155   :  { %v753_v30 = vpop.permute.xlu0 %752 }
 0x156   :  { %1179 = vst.msk [vmem:[%s3352_s1 + $0x662] sm:$0xff] %vm953_vm2, %v753_v30  ;;  %v779_v41 = vpop.permute.xlu1 %778 }
 0x157   :  { %1192 = vst.msk [vmem:[%s3352_s1 + $0x75a] sm:$0xff] %vm953_vm2, %v779_v41 }
 0x159   :  { %v757_v32 = vpop.permute.xlu0 %756 }
 0x15a   :  { %1181 = vst.msk [vmem:[%s3352_s1 + $0x67a] sm:$0xff] %vm953_vm2, %v757_v32  ;;  %v783_v43 = vpop.permute.xlu1 %782 }
 0x15b   :  { %1194 = vst.msk [vmem:[%s3352_s1 + $0x772] sm:$0xff] %vm953_vm2, %v783_v43 }
 0x15d   :  { %v761_v34 = vpop.permute.xlu0 %760 }
 0x15e   :  { %1183 = vst.msk [vmem:[%s3352_s1 + $0x6f2] sm:$0xff] %vm953_vm2, %v761_v34  ;;  %v787_v45 = vpop.permute.xlu1 %786 }
 0x15f   :  { %1196 = vst.msk [vmem:[%s3352_s1 + $0x78a] sm:$0xff] %vm953_vm2, %v787_v45 }
 0x161   :  { %v765_v36 = vpop.permute.xlu0 %764 }
 0x162   :  { %1185 = vst.msk [vmem:[%s3352_s1 + $0x70a] sm:$0xff] %vm953_vm2, %v765_v36  ;;  %v791_v47 = vpop.permute.xlu1 %790 }
 0x163   :  { %1198 = vst.msk [vmem:[%s3352_s1 + $0x7a2] sm:$0xff] %vm953_vm2, %v791_v47 }
 0x165   :  { %v769_v38 = vpop.permute.xlu0 %768 }
 0x166   :  { %1187 = vst.msk [vmem:[%s3352_s1 + $0x722] sm:$0xff] %vm953_vm2, %v769_v38  ;;  %v795_v49 = vpop.permute.xlu1 %794 }
 0x167   :  { %1200 = vst.msk [vmem:[%s3352_s1 + $0x81a] sm:$0xff] %vm953_vm2, %v795_v49 }
 0x169   :  { %v773_v40 = vpop.permute.xlu0 %772 }
 0x16a   :  { %1189 = vst.msk [vmem:[%s3352_s1 + $0x73a] sm:$0xff] %vm953_vm2, %v773_v40  ;;  %v799_v51 = vpop.permute.xlu1 %798 }
 0x16b   :  { %1202 = vst.msk [vmem:[%s3352_s1 + $0x832] sm:$0xff] %vm953_vm2, %v799_v51 }
 0x16d   :  { %v777_v42 = vpop.permute.xlu0 %776 }
 0x16e   :  { %1191 = vst.msk [vmem:[%s3352_s1 + $0x752] sm:$0xff] %vm953_vm2, %v777_v42  ;;  %v803_v53 = vpop.permute.xlu1 %802 }
 0x16f   :  { %1204 = vst.msk [vmem:[%s3352_s1 + $0x84a] sm:$0xff] %vm953_vm2, %v803_v53 }
 0x171   :  { %v781_v44 = vpop.permute.xlu0 %780 }
 0x172   :  { %1193 = vst.msk [vmem:[%s3352_s1 + $0x76a] sm:$0xff] %vm953_vm2, %v781_v44  ;;  %v807_v55 = vpop.permute.xlu1 %806 }
 0x173   :  { %1206 = vst.msk [vmem:[%s3352_s1 + $0x862] sm:$0xff] %vm953_vm2, %v807_v55 }
 0x175   :  { %v785_v46 = vpop.permute.xlu0 %784 }
 0x176   :  { %1195 = vst.msk [vmem:[%s3352_s1 + $0x782] sm:$0xff] %vm953_vm2, %v785_v46  ;;  %v811_v57 = vpop.permute.xlu1 %810 }
 0x177   :  { %1208 = vst.msk [vmem:[%s3352_s1 + $0x87a] sm:$0xff] %vm953_vm2, %v811_v57 }
 0x179   :  { %v789_v48 = vpop.permute.xlu0 %788 }
 0x17a   :  { %1197 = vst.msk [vmem:[%s3352_s1 + $0x79a] sm:$0xff] %vm953_vm2, %v789_v48  ;;  %v815_v59 = vpop.permute.xlu1 %814 }
 0x17b   :  { %1210 = vst.msk [vmem:[%s3352_s1 + $0x892] sm:$0xff] %vm953_vm2, %v815_v59 }
 0x17d   :  { %v793_v50 = vpop.permute.xlu0 %792 }
 0x17e   :  { %1199 = vst.msk [vmem:[%s3352_s1 + $0x812] sm:$0xff] %vm953_vm2, %v793_v50  ;;  %v819_v61 = vpop.permute.xlu1 %818 }
 0x17f   :  { %1212 = vst.msk [vmem:[%s3352_s1 + $0x8aa] sm:$0xff] %vm953_vm2, %v819_v61 }
 0x181   :  { %v797_v52 = vpop.permute.xlu0 %796 }
 0x182   :  { %1201 = vst.msk [vmem:[%s3352_s1 + $0x82a] sm:$0xff] %vm953_vm2, %v797_v52  ;;  %v823_v63 = vpop.permute.xlu1 %822 }
 0x183   :  { %1214 = vst.msk [vmem:[%s3352_s1 + $0x8c2] sm:$0xff] %vm953_vm2, %v823_v63 }
 0x185   :  { %v801_v54 = vpop.permute.xlu0 %800 }
 0x186   :  { %1203 = vst.msk [vmem:[%s3352_s1 + $0x842] sm:$0xff] %vm953_vm2, %v801_v54 }
 0x189   :  { %v805_v56 = vpop.permute.xlu0 %804 }
 0x18a   :  { %1205 = vst.msk [vmem:[%s3352_s1 + $0x85a] sm:$0xff] %vm953_vm2, %v805_v56 }
 0x18d   :  { %v809_v58 = vpop.permute.xlu0 %808 }
 0x18e   :  { %1207 = vst.msk [vmem:[%s3352_s1 + $0x872] sm:$0xff] %vm953_vm2, %v809_v58 }
 0x191   :  { %v813_v60 = vpop.permute.xlu0 %812 }
 0x192   :  { %1209 = vst.msk [vmem:[%s3352_s1 + $0x88a] sm:$0xff] %vm953_vm2, %v813_v60 }
 0x195   :  { %v817_v62 = vpop.permute.xlu0 %816 }
 0x196   :  { %1211 = vst.msk [vmem:[%s3352_s1 + $0x8a2] sm:$0xff] %vm953_vm2, %v817_v62 }
 0x199   :  { %v821_v0 = vpop.permute.xlu0 %820 }
 0x19a   :  { %1213 = vst.msk [vmem:[%s3352_s1 + $0x8ba] sm:$0xff] %vm953_vm2, %v821_v0 }
 0x19b   :  { %1086 = vsyncpa [#allocation3], 1 }

</bundles_post_ra>
